<compile_context>
chip_gen: v7x
topology: tpu7x:2x2x1
jax: 0.10.0
libtpu: 0.0.40
codegen_flags: <defaults>
</compile_context>

<pallas_src>
import math

import jax
import jax.numpy as jnp
from jax import lax
from jax.experimental import pallas as pl
from jax.experimental.pallas import tpu as pltpu

# LIF parameters (from HRSpikingModule.__init__)
TAU1 = math.exp(-1.5) + 1.0
TAU2 = math.exp(-1.0) + 1.0
TAU3 = math.exp(-0.8) + 1.0
TAU4 = math.exp(-1.0) + 1.0
INV_TAU1, INV_TAU2, INV_TAU3, INV_TAU4 = (1.0 / TAU1, 1.0 / TAU2,
                                          1.0 / TAU3, 1.0 / TAU4)
DECAY1, DECAY2, DECAY3, DECAY4 = (1.0 - INV_TAU1, 1.0 - INV_TAU2,
                                  1.0 - INV_TAU3, 1.0 - INV_TAU4)
TH1, TH2, TH3, TH4 = 0.14, 0.08, 0.06, 0.08


def _make_kernel(compute_dtype):
    """Kernel factory; `compute_dtype` is the MXU operand dtype for the
    spike-side matmuls (spikes are exactly 0/1, so casting them is lossless)."""

    def kernel(x_ref, wc_hbm, bc_ref, wfc_hbm, wsk_hbm, bo_ref, out_ref,
               wc_ref, wfc_ref, wsk_ref, dma_sem, v123_ref, v4_ref):
        tile_t, d_in = x_ref.shape
        nb = tile_t // 8               # wrapper guarantees tile_t % 8 == 0

        # ---- first grid step: zero the carried LIF state and DMA the weight
        #      matrices ONCE into single-buffered resident VMEM scratch -------
        @pl.when(pl.program_id(0) == 0)
        def _init():
            v123_ref[...] = jnp.zeros_like(v123_ref)
            v4_ref[...] = jnp.zeros_like(v4_ref)
            copies = [pltpu.make_async_copy(wc_hbm, wc_ref, dma_sem.at[0]),
                      pltpu.make_async_copy(wfc_hbm, wfc_ref, dma_sem.at[1]),
                      pltpu.make_async_copy(wsk_hbm, wsk_ref, dma_sem.at[2])]
            for c in copies:
                c.start()
            for c in copies:
                c.wait()

        # Per-chain LIF constants packed along the (3*D) lane axis; hoisted out
        # of the recurrence loops (loop-invariant constants).
        def pack3(a, b, c):
            return jnp.concatenate(
                [jnp.full((1, d_in), a, jnp.float32),
                 jnp.full((1, d_in), b, jnp.float32),
                 jnp.full((1, d_in), c, jnp.float32)], axis=-1)

        inv_tau123 = pack3(INV_TAU1, INV_TAU2, INV_TAU3)
        decay123 = pack3(DECAY1, DECAY2, DECAY3)
        theta123 = pack3(TH1, TH2, TH3)

        # 8 steps of the three packed hybrid chains (spikingjelly LIFNode with
        # v_reset=0: h = v + (x - v)/tau == v*(1 - 1/tau) + x/tau; hard reset).
        def hybrid8(x_blk, v):
            # vectorized per-block drive -> concat/scale stay OFF the serial chain
            drive = jnp.concatenate([x_blk, x_blk, x_blk], axis=-1) * inv_tau123
            rows = []
            for j in range(8):
                h = v * decay123 + drive[j:j + 1, :]
                ge = h >= theta123
                rows.append(ge.astype(jnp.float32))
                v = jnp.where(ge, 0.0, h)
            return v, jnp.concatenate(rows, axis=0)            # (8, 3*D) spikes

        # conv(k=3) on an 8-row spike block (1/tau4 pre-folded into wc/bc), the
        # lif4 recurrence over those 8 rows, then the fc + skip output rows.
        def conv_lif4_out8(t0, spk_blk, x_blk, v4):
            cv = (jnp.dot(spk_blk.astype(compute_dtype), wc_ref[...],
                          preferred_element_type=jnp.float32)
                  + bc_ref[...])                               # (8, D) == conv/tau4
            rows = []
            for j in range(8):
                h = v4 * DECAY4 + cv[j:j + 1, :]
                ge = h >= TH4
                rows.append(ge.astype(jnp.float32))
                v4 = jnp.where(ge, 0.0, h)
            s4 = jnp.concatenate(rows, axis=0)                 # (8, D) spikes
            out_ref[pl.ds(t0, 8), :] = (
                jnp.dot(s4.astype(compute_dtype), wfc_ref[...],
                        preferred_element_type=jnp.float32)
                + jnp.dot(x_blk, wsk_ref[...],                 # skip path stays f32
                          preferred_element_type=jnp.float32)
                + bo_ref[...]).astype(out_ref.dtype)
            return v4

        # ---- software-skewed fusion: hybrid(b) runs alongside conv+lif4+out
        #      of block b-1 (independent chains -> bundles interleave) --------
        x0 = x_ref[pl.ds(0, 8), :]
        v123, spk_prev = hybrid8(x0, v123_ref[...])

        def body(b, carry):
            v123, v4, spk_prev, x_prev = carry
            t_prev = pl.multiple_of((b - 1) * 8, 8)
            t_cur = pl.multiple_of(b * 8, 8)
            x_cur = x_ref[pl.ds(t_cur, 8), :]                  # one aligned load
            v4 = conv_lif4_out8(t_prev, spk_prev, x_prev, v4)
            v123, spk_cur = hybrid8(x_cur, v123)
            return v123, v4, spk_cur, x_cur

        v123, v4, spk_prev, x_prev = lax.fori_loop(
            1, nb, body, (v123, v4_ref[...], spk_prev, x0))
        v4 = conv_lif4_out8((nb - 1) * 8, spk_prev, x_prev, v4)

        # carry the membrane potentials to the next time chunk
        v123_ref[...] = v123
        v4_ref[...] = v4

    return kernel


# ------------------------- VMEM budgeting helpers ---------------------------

def _round_up(v, m):
    return (v + m - 1) // m * m


def _pad_bytes(rows, cols, itemsize=4):
    # (8, 128)-tile padded VMEM footprint of a 2D buffer (4-byte accounting is
    # a safe upper bound for bf16 as well).
    return _round_up(max(rows, 1), 8) * _round_up(max(cols, 1), 128) * itemsize


def _vmem_capacity_bytes():
    try:
        cap = getattr(pltpu.get_tpu_info(), "vmem_capacity_bytes", None)
        if cap:
            return int(cap)
    except Exception:
        pass
    return 64 * 2 ** 20        # assume the smallest (v7x, 64 MiB) if query fails


def _vmem_footprint(tile_t, d_in, d_out_p, w_isz):
    b = 0
    b += 2 * _pad_bytes(tile_t, d_in)                   # x block (double-buffered)
    b += 2 * _pad_bytes(tile_t, d_out_p)                # out block (double-buffered)
    b += 2 * (_pad_bytes(1, d_in) + _pad_bytes(1, d_out_p))        # biases
    b += _pad_bytes(3 * d_in, d_in, w_isz)              # conv W   (single-buffered)
    b += _pad_bytes(d_in, d_out_p, w_isz)               # fc W     (single-buffered)
    b += _pad_bytes(d_in, d_out_p)                      # skip W   (single-buffered)
    b += _pad_bytes(1, 3 * d_in) + _pad_bytes(1, d_in)              # carried state
    b += 4 * _pad_bytes(8, 3 * d_in) + 4 * _pad_bytes(8, d_out_p)   # loop-live vals
    return b


def _pick_tile_t(t_len, d_in, d_out_p, cap, w_isz):
    budget = (cap * 3) // 4          # headroom for Mosaic-internal scratch
    tile = max(8, _round_up(t_len, 8))   # single chunk if it fits: the kernel is
    while tile > 8 and _vmem_footprint(tile, d_in, d_out_p, w_isz) > budget:
        tile = max(8, _round_up(tile // 2, 8))   # recurrence-bound, so chunk only
    return tile                                  # when VMEM forces it


def _vmem_limit_bytes(tile_t, d_in, d_out_p, cap, w_isz):
    est = _vmem_footprint(tile_t, d_in, d_out_p, w_isz)
    # limit derived from the estimate plus margin (no fixed 32 MiB floor),
    # capped below physical VMEM (64 MiB on v7x, 128 MiB on v5e/v6e).
    return int(min(4 * est + (8 << 20), (cap * 9) // 10))


# ------------------------------- wrapper -------------------------------------

def hr_spiking_forward(x, params, *, tile_t=None, compute_dtype=jnp.float32):
    x = jnp.asarray(x, jnp.float32)
    t_len, d_in = x.shape
    d_out = params["w_fc_t"].shape[1]
    d_out_p = _round_up(d_out, 128)             # lane-dense output columns

    # --- host-side weight prep: Conv1d(k=3) over the length-3 concat axis is
    #     one matmul with stacked taps; lif4's 1/tau4 folded into conv W/b ----
    w_conv3 = (jnp.concatenate([params["w_conv_t0"], params["w_conv_t1"],
                                params["w_conv_t2"]], axis=0)
               * INV_TAU4).astype(compute_dtype)              # (3*d_in, d_in)
    b_conv = (params["b_conv"] * INV_TAU4).astype(jnp.float32)
    pad_c = ((0, 0), (0, d_out_p - d_out))
    w_fc = jnp.pad(params["w_fc_t"], pad_c).astype(compute_dtype)
    w_skip = jnp.pad(params["w_skip_t"], pad_c).astype(jnp.float32)
    b_out = jnp.pad(params["b_fc"] + params["b_skip"], pad_c).astype(jnp.float32)

    # --- generation-aware time tiling ----------------------------------------
    cap = _vmem_capacity_bytes()
    w_isz = jnp.dtype(compute_dtype).itemsize
    if tile_t is None:
        tile_t = _pick_tile_t(t_len, d_in, d_out_p, cap, w_isz)
    assert tile_t >= 8 and tile_t % 8 == 0, "tile_t must be a multiple of 8"
    t_pad = _round_up(t_len, tile_t)            # pad time; extra rows sliced off
    if t_pad != t_len:
        x = jnp.pad(x, ((0, t_pad - t_len), (0, 0)))

    grid_spec = pltpu.PrefetchScalarGridSpec(
        num_scalar_prefetch=0,
        grid=(t_pad // tile_t,),
        in_specs=[
            pl.BlockSpec((tile_t, d_in), lambda i: (i, 0)),     # x time chunk
            pl.BlockSpec(memory_space=pl.ANY),                  # conv W (HBM)
            pl.BlockSpec((1, d_in), lambda i: (0, 0)),          # conv b
            pl.BlockSpec(memory_space=pl.ANY),                  # fc W (HBM)
            pl.BlockSpec(memory_space=pl.ANY),                  # skip W (HBM)
            pl.BlockSpec((1, d_out_p), lambda i: (0, 0)),       # fused bias
        ],
        out_specs=pl.BlockSpec((tile_t, d_out_p), lambda i: (i, 0)),
        scratch_shapes=[
            pltpu.VMEM((3 * d_in, d_in), compute_dtype),        # conv W (resident)
            pltpu.VMEM((d_in, d_out_p), compute_dtype),         # fc W   (resident)
            pltpu.VMEM((d_in, d_out_p), jnp.float32),           # skip W (resident)
            pltpu.SemaphoreType.DMA((3,)),                      # weight DMA sems
            pltpu.VMEM((1, 3 * d_in), jnp.float32),             # carried v1..v3
            pltpu.VMEM((1, d_in), jnp.float32),                 # carried v4
        ],
    )

    out = pl.pallas_call(
        _make_kernel(compute_dtype),
        out_shape=jax.ShapeDtypeStruct((t_pad, d_out_p), jnp.float32),
        grid_spec=grid_spec,
        compiler_params=pltpu.CompilerParams(
            # the time axis is a stateful recurrence -> must run sequentially
            dimension_semantics=("arbitrary",),
            vmem_limit_bytes=_vmem_limit_bytes(tile_t, d_in, d_out_p, cap, w_isz),
        ),
    )(x, w_conv3, b_conv, w_fc, w_skip, b_out)
    return out[:t_len, :d_out]


def init_params(key, d_in, d_out):
    """Deterministic synthetic parameters matching the PyTorch layer shapes."""
    ks = jax.random.split(key, 6)

    def unif(k, shape, fan_in):
        bound = 1.0 / math.sqrt(fan_in)
        return jax.random.uniform(k, shape, jnp.float32, -bound, bound)

    # Conv1d(d_in, d_in, kernel_size=3): weight (d_in, d_in, 3), bias (d_in,)
    w_conv = unif(ks[0], (d_in, d_in, 3), d_in * 3)
    b_conv = unif(ks[1], (d_in,), d_in * 3)
    # Linear(d_in, d_out): weight (d_out, d_in), bias (d_out,)
    w_fc = unif(ks[2], (d_out, d_in), d_in)
    b_fc = unif(ks[3], (d_out,), d_in)
    # Conv1d(d_in, d_out, kernel_size=1): weight (d_out, d_in, 1), bias (d_out,)
    w_skip = unif(ks[4], (d_out, d_in, 1), d_in)
    b_skip = unif(ks[5], (d_out,), d_in)

    return {
        # conv tap k, transposed so the kernel computes spikes @ W -> (T, d_in)
        "w_conv_t0": jnp.transpose(w_conv[:, :, 0]),
        "w_conv_t1": jnp.transpose(w_conv[:, :, 1]),
        "w_conv_t2": jnp.transpose(w_conv[:, :, 2]),
        "b_conv": b_conv.reshape(1, d_in),
        "w_fc_t": jnp.transpose(w_fc),                 # (d_in, d_out)
        "b_fc": b_fc.reshape(1, d_out),
        "w_skip_t": jnp.transpose(w_skip[:, :, 0]),    # (d_in, d_out)
        "b_skip": b_skip.reshape(1, d_out),
    }


def hr_spiking_reference(x, params):
    """Pure-JAX reference of the same semantics (for verification).

    Uses the algebraically identical decay form h = v*(1 - 1/tau) + x/tau
    (== v + (x - v)/tau) and folds 1/tau4 into the conv weights, matching the
    kernel's formulation so elementwise rounding is identical."""

    def lif_seq(drive, decay, theta):
        # `drive` is already x * (1/tau); hard reset to 0, spike if h >= theta.
        def step(v, dr):
            h = v * decay + dr
            ge = h >= theta
            return jnp.where(ge, 0.0, h), ge.astype(jnp.float32)
        _, spikes = lax.scan(step, jnp.zeros((drive.shape[-1],), jnp.float32),
                             drive)
        return spikes

    sp1 = lif_seq(x * INV_TAU1, DECAY1, TH1)
    sp2 = lif_seq(x * INV_TAU2, DECAY2, TH2)
    sp3 = lif_seq(x * INV_TAU3, DECAY3, TH3)
    # Conv1d(k=3) over the length-3 concat axis == one stacked-tap matmul,
    # pre-scaled by 1/tau4 (exact linear-algebra identity of the module).
    w_conv3 = jnp.concatenate([params["w_conv_t0"], params["w_conv_t1"],
                               params["w_conv_t2"]], axis=0) * INV_TAU4
    conv4 = (jnp.concatenate([sp1, sp2, sp3], axis=-1) @ w_conv3
             + params["b_conv"] * INV_TAU4)
    sp4 = lif_seq(conv4, DECAY4, TH4)
    return (sp4 @ params["w_fc_t"] + params["b_fc"]
            + x @ params["w_skip_t"] + params["b_skip"])


if __name__ == "__main__":
    key = jax.random.PRNGKey(0)
    kx, kp, kx2, kp2 = jax.random.split(key, 4)

    # Case 1: T=64, D_IN=32, D_OUT=32 -- single time chunk (fits in VMEM).
    T, D_IN, D_OUT = 64, 32, 32
    x = jax.random.uniform(kx, (T, D_IN), jnp.float32, 0.0, 1.0)
    params = init_params(kp, D_IN, D_OUT)
    ref = hr_spiking_reference(x, params)

    out = jax.block_until_ready(hr_spiking_forward(x, params))
    assert out.shape == (T, D_OUT)
    assert jnp.allclose(out, ref, atol=1e-4, rtol=1e-4), "mismatch (single chunk)"

    # Case 2: same problem, forced small time tile -> exercises the pipelined
    # grid and the LIF membrane state carried across grid steps in VMEM.
    out_tiled = jax.block_until_ready(hr_spiking_forward(x, params, tile_t=16))
    assert jnp.allclose(out_tiled, ref, atol=1e-4, rtol=1e-4), "mismatch (tiled)"

    # Case 3: ragged T and d_out < 128 -> exercises time padding and the
    # lane-dense (zero-padded, later sliced) output columns.
    T2, D_IN2, D_OUT2 = 52, 32, 20
    x2 = jax.random.uniform(kx2, (T2, D_IN2), jnp.float32, 0.0, 1.0)
    params2 = init_params(kp2, D_IN2, D_OUT2)
    ref2 = hr_spiking_reference(x2, params2)
    out2 = jax.block_until_ready(hr_spiking_forward(x2, params2))
    assert out2.shape == (T2, D_OUT2)
    assert jnp.allclose(out2, ref2, atol=1e-4, rtol=1e-4), "mismatch (ragged)"

    print("KERNEL_OK")
</pallas_src>

<mosaic_0001>
module attributes {stable_mosaic.version = 11 : i64} {
  func.func @kernel(%arg0: i32, %arg1: memref<64x32xf32, #tpu.memory_space<vmem>>, %arg2: memref<96x32xf32, #tpu.memory_space<any>>, %arg3: memref<1x32xf32, #tpu.memory_space<vmem>>, %arg4: memref<32x128xf32, #tpu.memory_space<any>>, %arg5: memref<32x128xf32, #tpu.memory_space<any>>, %arg6: memref<1x128xf32, #tpu.memory_space<vmem>>, %arg7: memref<64x128xf32, #tpu.memory_space<vmem>>, %arg8: memref<96x32xf32, #tpu.memory_space<vmem>>, %arg9: memref<32x128xf32, #tpu.memory_space<vmem>>, %arg10: memref<32x128xf32, #tpu.memory_space<vmem>>, %arg11: memref<3x!tpu.dma_semaphore, #tpu.memory_space<semaphore_mem>>, %arg12: memref<1x96xf32, #tpu.memory_space<vmem>>, %arg13: memref<1x32xf32, #tpu.memory_space<vmem>>) attributes {dimension_semantics = [#tpu.dimension_semantics<arbitrary>], iteration_bounds = array<i64: 1>, scalar_prefetch = 0 : i64, scratch_operands = 6 : i64, tpu.core_type = #tpu.core_type<tc>, window_params = [{transform_indices = @transform_0, window_bounds = array<i64: 64, 32>}, {}, {pipeline_mode = #tpu.pipeline_mode<synchronous>, transform_indices = @transform_2, window_bounds = array<i64: 1, 32>}, {}, {}, {pipeline_mode = #tpu.pipeline_mode<synchronous>, transform_indices = @transform_5, window_bounds = array<i64: 1, 128>}, {transform_indices = @transform_6, window_bounds = array<i64: 64, 128>}]} {
    %c0_i32 = arith.constant 0 : i32
    %0 = arith.cmpi eq, %arg0, %c0_i32 : i32
    %1 = arith.extui %0 : i1 to i32
    %c0_i32_0 = arith.constant 0 : i32
    %2 = arith.cmpi ne, %1, %c0_i32_0 : i32
    scf.if %2 {
      %cst_66 = arith.constant 0.000000e+00 : f32
      %185 = vector.broadcast %cst_66 : f32 to vector<1x96xf32>
      %c0_67 = arith.constant 0 : index
      %c0_68 = arith.constant 0 : index
      %186 = vector.load %arg12[%c0_67, %c0_68] : memref<1x96xf32, #tpu.memory_space<vmem>>, vector<1x96xf32>
      tpu.vector_store %arg12[%c0_67, %c0_68], %185 {strides = array<i32>} : memref<1x96xf32, #tpu.memory_space<vmem>>, vector<1x96xf32>,
      %cst_69 = arith.constant 0.000000e+00 : f32
      %187 = vector.broadcast %cst_69 : f32 to vector<1x32xf32>
      %c0_70 = arith.constant 0 : index
      %c0_71 = arith.constant 0 : index
      %188 = vector.load %arg13[%c0_70, %c0_71] : memref<1x32xf32, #tpu.memory_space<vmem>>, vector<1x32xf32>
      tpu.vector_store %arg13[%c0_70, %c0_71], %187 {strides = array<i32>} : memref<1x32xf32, #tpu.memory_space<vmem>>, vector<1x32xf32>,
      %c0_i32_72 = arith.constant 0 : i32
      %189 = tpu.memref_slice %arg11[%c0_i32_72] : memref<3x!tpu.dma_semaphore, #tpu.memory_space<semaphore_mem>> -> memref<1x!tpu.dma_semaphore, #tpu.memory_space<semaphore_mem>>
      %190 = tpu.memref_squeeze %189 : memref<1x!tpu.dma_semaphore, #tpu.memory_space<semaphore_mem>> -> memref<!tpu.dma_semaphore, #tpu.memory_space<semaphore_mem>>
      tpu.enqueue_dma source(%arg2 : memref<96x32xf32, #tpu.memory_space<any>>) target(%arg8 : memref<96x32xf32, #tpu.memory_space<vmem>>) target_semaphore(%190 : memref<!tpu.dma_semaphore, #tpu.memory_space<semaphore_mem>>)
      %c1_i32_73 = arith.constant 1 : i32
      %191 = tpu.memref_slice %arg11[%c1_i32_73] : memref<3x!tpu.dma_semaphore, #tpu.memory_space<semaphore_mem>> -> memref<1x!tpu.dma_semaphore, #tpu.memory_space<semaphore_mem>>
      %192 = tpu.memref_squeeze %191 : memref<1x!tpu.dma_semaphore, #tpu.memory_space<semaphore_mem>> -> memref<!tpu.dma_semaphore, #tpu.memory_space<semaphore_mem>>
      tpu.enqueue_dma source(%arg4 : memref<32x128xf32, #tpu.memory_space<any>>) target(%arg9 : memref<32x128xf32, #tpu.memory_space<vmem>>) target_semaphore(%192 : memref<!tpu.dma_semaphore, #tpu.memory_space<semaphore_mem>>)
      %c2_i32 = arith.constant 2 : i32
      %193 = tpu.memref_slice %arg11[%c2_i32] : memref<3x!tpu.dma_semaphore, #tpu.memory_space<semaphore_mem>> -> memref<1x!tpu.dma_semaphore, #tpu.memory_space<semaphore_mem>>
      %194 = tpu.memref_squeeze %193 : memref<1x!tpu.dma_semaphore, #tpu.memory_space<semaphore_mem>> -> memref<!tpu.dma_semaphore, #tpu.memory_space<semaphore_mem>>
      tpu.enqueue_dma source(%arg5 : memref<32x128xf32, #tpu.memory_space<any>>) target(%arg10 : memref<32x128xf32, #tpu.memory_space<vmem>>) target_semaphore(%194 : memref<!tpu.dma_semaphore, #tpu.memory_space<semaphore_mem>>)
      %c0_i32_74 = arith.constant 0 : i32
      %195 = tpu.memref_slice %arg11[%c0_i32_74] : memref<3x!tpu.dma_semaphore, #tpu.memory_space<semaphore_mem>> -> memref<1x!tpu.dma_semaphore, #tpu.memory_space<semaphore_mem>>
      %196 = tpu.memref_squeeze %195 : memref<1x!tpu.dma_semaphore, #tpu.memory_space<semaphore_mem>> -> memref<!tpu.dma_semaphore, #tpu.memory_space<semaphore_mem>>
      tpu.wait_dma2 semaphore(%196 : memref<!tpu.dma_semaphore, #tpu.memory_space<semaphore_mem>>) src(%arg2 : memref<96x32xf32, #tpu.memory_space<any>>) dst(%arg8 : memref<96x32xf32, #tpu.memory_space<vmem>>)
      %c1_i32_75 = arith.constant 1 : i32
      %197 = tpu.memref_slice %arg11[%c1_i32_75] : memref<3x!tpu.dma_semaphore, #tpu.memory_space<semaphore_mem>> -> memref<1x!tpu.dma_semaphore, #tpu.memory_space<semaphore_mem>>
      %198 = tpu.memref_squeeze %197 : memref<1x!tpu.dma_semaphore, #tpu.memory_space<semaphore_mem>> -> memref<!tpu.dma_semaphore, #tpu.memory_space<semaphore_mem>>
      tpu.wait_dma2 semaphore(%198 : memref<!tpu.dma_semaphore, #tpu.memory_space<semaphore_mem>>) src(%arg4 : memref<32x128xf32, #tpu.memory_space<any>>) dst(%arg9 : memref<32x128xf32, #tpu.memory_space<vmem>>)
      %c2_i32_76 = arith.constant 2 : i32
      %199 = tpu.memref_slice %arg11[%c2_i32_76] : memref<3x!tpu.dma_semaphore, #tpu.memory_space<semaphore_mem>> -> memref<1x!tpu.dma_semaphore, #tpu.memory_space<semaphore_mem>>
      %200 = tpu.memref_squeeze %199 : memref<1x!tpu.dma_semaphore, #tpu.memory_space<semaphore_mem>> -> memref<!tpu.dma_semaphore, #tpu.memory_space<semaphore_mem>>
      tpu.wait_dma2 semaphore(%200 : memref<!tpu.dma_semaphore, #tpu.memory_space<semaphore_mem>>) src(%arg5 : memref<32x128xf32, #tpu.memory_space<any>>) dst(%arg10 : memref<32x128xf32, #tpu.memory_space<vmem>>)
    } else {
    }
    %cst = arith.constant 0.817574501 : f32
    %3 = vector.broadcast %cst : f32 to vector<1x32xf32>
    %cst_1 = arith.constant 0.731058597 : f32
    %4 = vector.broadcast %cst_1 : f32 to vector<1x32xf32>
    %cst_2 = arith.constant 0.689974486 : f32
    %5 = vector.broadcast %cst_2 : f32 to vector<1x32xf32>
    %6 = tpu.concatenate %3, %4, %5 in 1 : vector<1x32xf32>, vector<1x32xf32>, vector<1x32xf32> -> vector<1x96xf32>
    %cst_3 = arith.constant 0.182425529 : f32
    %7 = vector.broadcast %cst_3 : f32 to vector<1x32xf32>
    %cst_4 = arith.constant 0.268941432 : f32
    %8 = vector.broadcast %cst_4 : f32 to vector<1x32xf32>
    %cst_5 = arith.constant 0.310025513 : f32
    %9 = vector.broadcast %cst_5 : f32 to vector<1x32xf32>
    %10 = tpu.concatenate %7, %8, %9 in 1 : vector<1x32xf32>, vector<1x32xf32>, vector<1x32xf32> -> vector<1x96xf32>
    %cst_6 = arith.constant 1.400000e-01 : f32
    %11 = vector.broadcast %cst_6 : f32 to vector<1x32xf32>
    %cst_7 = arith.constant 8.000000e-02 : f32
    %12 = vector.broadcast %cst_7 : f32 to vector<1x32xf32>
    %cst_8 = arith.constant 6.000000e-02 : f32
    %13 = vector.broadcast %cst_8 : f32 to vector<1x32xf32>
    %14 = tpu.concatenate %11, %12, %13 in 1 : vector<1x32xf32>, vector<1x32xf32>, vector<1x32xf32> -> vector<1x96xf32>
    %c0 = arith.constant 0 : index
    %c0_9 = arith.constant 0 : index
    %15 = vector.load %arg1[%c0, %c0_9] : memref<64x32xf32, #tpu.memory_space<vmem>>, vector<8x32xf32>
    %c0_10 = arith.constant 0 : index
    %c0_11 = arith.constant 0 : index
    %16 = vector.load %arg12[%c0_10, %c0_11] : memref<1x96xf32, #tpu.memory_space<vmem>>, vector<1x96xf32>
    %17 = tpu.concatenate %15, %15, %15 in 1 : vector<8x32xf32>, vector<8x32xf32>, vector<8x32xf32> -> vector<8x96xf32>
    %18 = vector.broadcast %6 : vector<1x96xf32> to vector<8x96xf32>
    %19 = arith.mulf %17, %18 : vector<8x96xf32>
    %20 = arith.mulf %16, %10 : vector<1x96xf32>
    %21 = vector.extract_strided_slice %19 {offsets = [0, 0], sizes = [1, 96], strides = [1, 1]} : vector<8x96xf32> to vector<1x96xf32>
    %22 = arith.addf %20, %21 : vector<1x96xf32>
    %23 = arith.cmpf oge, %22, %14 : vector<1x96xf32>
    %24 = arith.extui %23 : vector<1x96xi1> to vector<1x96xi32>
    %25 = arith.sitofp %24 : vector<1x96xi32> to vector<1x96xf32>
    %cst_12 = arith.constant 0.000000e+00 : f32
    %26 = vector.broadcast %cst_12 : f32 to vector<1x96xf32>
    %27 = arith.select %23, %26, %22 : vector<1x96xi1>, vector<1x96xf32>
    %28 = arith.mulf %27, %10 : vector<1x96xf32>
    %29 = vector.extract_strided_slice %19 {offsets = [1, 0], sizes = [1, 96], strides = [1, 1]} : vector<8x96xf32> to vector<1x96xf32>
    %30 = arith.addf %28, %29 : vector<1x96xf32>
    %31 = arith.cmpf oge, %30, %14 : vector<1x96xf32>
    %32 = arith.extui %31 : vector<1x96xi1> to vector<1x96xi32>
    %33 = arith.sitofp %32 : vector<1x96xi32> to vector<1x96xf32>
    %cst_13 = arith.constant 0.000000e+00 : f32
    %34 = vector.broadcast %cst_13 : f32 to vector<1x96xf32>
    %35 = arith.select %31, %34, %30 : vector<1x96xi1>, vector<1x96xf32>
    %36 = arith.mulf %35, %10 : vector<1x96xf32>
    %37 = vector.extract_strided_slice %19 {offsets = [2, 0], sizes = [1, 96], strides = [1, 1]} : vector<8x96xf32> to vector<1x96xf32>
    %38 = arith.addf %36, %37 : vector<1x96xf32>
    %39 = arith.cmpf oge, %38, %14 : vector<1x96xf32>
    %40 = arith.extui %39 : vector<1x96xi1> to vector<1x96xi32>
    %41 = arith.sitofp %40 : vector<1x96xi32> to vector<1x96xf32>
    %cst_14 = arith.constant 0.000000e+00 : f32
    %42 = vector.broadcast %cst_14 : f32 to vector<1x96xf32>
    %43 = arith.select %39, %42, %38 : vector<1x96xi1>, vector<1x96xf32>
    %44 = arith.mulf %43, %10 : vector<1x96xf32>
    %45 = vector.extract_strided_slice %19 {offsets = [3, 0], sizes = [1, 96], strides = [1, 1]} : vector<8x96xf32> to vector<1x96xf32>
    %46 = arith.addf %44, %45 : vector<1x96xf32>
    %47 = arith.cmpf oge, %46, %14 : vector<1x96xf32>
    %48 = arith.extui %47 : vector<1x96xi1> to vector<1x96xi32>
    %49 = arith.sitofp %48 : vector<1x96xi32> to vector<1x96xf32>
    %cst_15 = arith.constant 0.000000e+00 : f32
    %50 = vector.broadcast %cst_15 : f32 to vector<1x96xf32>
    %51 = arith.select %47, %50, %46 : vector<1x96xi1>, vector<1x96xf32>
    %52 = arith.mulf %51, %10 : vector<1x96xf32>
    %53 = vector.extract_strided_slice %19 {offsets = [4, 0], sizes = [1, 96], strides = [1, 1]} : vector<8x96xf32> to vector<1x96xf32>
    %54 = arith.addf %52, %53 : vector<1x96xf32>
    %55 = arith.cmpf oge, %54, %14 : vector<1x96xf32>
    %56 = arith.extui %55 : vector<1x96xi1> to vector<1x96xi32>
    %57 = arith.sitofp %56 : vector<1x96xi32> to vector<1x96xf32>
    %cst_16 = arith.constant 0.000000e+00 : f32
    %58 = vector.broadcast %cst_16 : f32 to vector<1x96xf32>
    %59 = arith.select %55, %58, %54 : vector<1x96xi1>, vector<1x96xf32>
    %60 = arith.mulf %59, %10 : vector<1x96xf32>
    %61 = vector.extract_strided_slice %19 {offsets = [5, 0], sizes = [1, 96], strides = [1, 1]} : vector<8x96xf32> to vector<1x96xf32>
    %62 = arith.addf %60, %61 : vector<1x96xf32>
    %63 = arith.cmpf oge, %62, %14 : vector<1x96xf32>
    %64 = arith.extui %63 : vector<1x96xi1> to vector<1x96xi32>
    %65 = arith.sitofp %64 : vector<1x96xi32> to vector<1x96xf32>
    %cst_17 = arith.constant 0.000000e+00 : f32
    %66 = vector.broadcast %cst_17 : f32 to vector<1x96xf32>
    %67 = arith.select %63, %66, %62 : vector<1x96xi1>, vector<1x96xf32>
    %68 = arith.mulf %67, %10 : vector<1x96xf32>
    %69 = vector.extract_strided_slice %19 {offsets = [6, 0], sizes = [1, 96], strides = [1, 1]} : vector<8x96xf32> to vector<1x96xf32>
    %70 = arith.addf %68, %69 : vector<1x96xf32>
    %71 = arith.cmpf oge, %70, %14 : vector<1x96xf32>
    %72 = arith.extui %71 : vector<1x96xi1> to vector<1x96xi32>
    %73 = arith.sitofp %72 : vector<1x96xi32> to vector<1x96xf32>
    %cst_18 = arith.constant 0.000000e+00 : f32
    %74 = vector.broadcast %cst_18 : f32 to vector<1x96xf32>
    %75 = arith.select %71, %74, %70 : vector<1x96xi1>, vector<1x96xf32>
    %76 = arith.mulf %75, %10 : vector<1x96xf32>
    %77 = vector.extract_strided_slice %19 {offsets = [7, 0], sizes = [1, 96], strides = [1, 1]} : vector<8x96xf32> to vector<1x96xf32>
    %78 = arith.addf %76, %77 : vector<1x96xf32>
    %79 = arith.cmpf oge, %78, %14 : vector<1x96xf32>
    %80 = arith.extui %79 : vector<1x96xi1> to vector<1x96xi32>
    %81 = arith.sitofp %80 : vector<1x96xi32> to vector<1x96xf32>
    %cst_19 = arith.constant 0.000000e+00 : f32
    %82 = vector.broadcast %cst_19 : f32 to vector<1x96xf32>
    %83 = arith.select %79, %82, %78 : vector<1x96xi1>, vector<1x96xf32>
    %84 = tpu.concatenate %25, %33, %41, %49, %57, %65, %73, %81 in 0 : vector<1x96xf32>, vector<1x96xf32>, vector<1x96xf32>, vector<1x96xf32>, vector<1x96xf32>, vector<1x96xf32>, vector<1x96xf32>, vector<1x96xf32> -> vector<8x96xf32>
    %c0_20 = arith.constant 0 : index
    %c0_21 = arith.constant 0 : index
    %85 = vector.load %arg13[%c0_20, %c0_21] : memref<1x32xf32, #tpu.memory_space<vmem>>, vector<1x32xf32>
    %c1_i32 = arith.constant 1 : i32
    %c7_i32 = arith.constant 7 : i32
    %86 = arith.addi %c1_i32, %c7_i32 : i32
    %c1_i32_22 = arith.constant 1 : i32
    %87:4 = scf.for %arg14 = %c1_i32 to %86 step %c1_i32_22 iter_args(%arg15 = %83, %arg16 = %85, %arg17 = %84, %arg18 = %15) -> (vector<1x96xf32>, vector<1x32xf32>, vector<8x96xf32>, vector<8x32xf32>)  : i32 {
      %c1_i32_66 = arith.constant 1 : i32
      %185 = arith.subi %arg14, %c1_i32_66 : i32
      %c8_i32 = arith.constant 8 : i32
      %186 = arith.muli %185, %c8_i32 : i32
      %187 = tpu.assume_multiple %186, 8 : i32
      %c8_i32_67 = arith.constant 8 : i32
      %188 = arith.muli %arg14, %c8_i32_67 : i32
      %189 = tpu.assume_multiple %188, 8 : i32
      %190 = arith.index_cast %189 : i32 to index
      %c0_68 = arith.constant 0 : index
      %191 = vector.load %arg1[%190, %c0_68] : memref<64x32xf32, #tpu.memory_space<vmem>>, vector<8x32xf32>
      %c0_69 = arith.constant 0 : index
      %c0_70 = arith.constant 0 : index
      %192 = vector.load %arg8[%c0_69, %c0_70] : memref<96x32xf32, #tpu.memory_space<vmem>>, vector<96x32xf32>
      %cst_71 = arith.constant dense<0.000000e+00> : vector<8x32xf32>
      %193 = tpu.matmul %arg17, %192, %cst_71 {dimension_numbers = #tpu.dot_dimension_numbers<[1], [0], [0], [1], [0, 0, 1, 1], [], []>} : vector<8x96xf32>, vector<96x32xf32>, vector<8x32xf32> -> vector<8x32xf32>
      %c0_72 = arith.constant 0 : index
      %c0_73 = arith.constant 0 : index
      %194 = vector.load %arg3[%c0_72, %c0_73] : memref<1x32xf32, #tpu.memory_space<vmem>>, vector<1x32xf32>
      %195 = vector.broadcast %194 : vector<1x32xf32> to vector<8x32xf32>
      %196 = arith.addf %193, %195 : vector<8x32xf32>
      %cst_74 = arith.constant 0.268941432 : f32
      %197 = vector.broadcast %cst_74 : f32 to vector<1x32xf32>
      %198 = arith.mulf %arg16, %197 : vector<1x32xf32>
      %199 = vector.extract_strided_slice %196 {offsets = [0, 0], sizes = [1, 32], strides = [1, 1]} : vector<8x32xf32> to vector<1x32xf32>
      %200 = arith.addf %198, %199 : vector<1x32xf32>
      %cst_75 = arith.constant 8.000000e-02 : f32
      %201 = vector.broadcast %cst_75 : f32 to vector<1x32xf32>
      %202 = arith.cmpf oge, %200, %201 : vector<1x32xf32>
      %203 = arith.extui %202 : vector<1x32xi1> to vector<1x32xi32>
      %204 = arith.sitofp %203 : vector<1x32xi32> to vector<1x32xf32>
      %cst_76 = arith.constant 0.000000e+00 : f32
      %205 = vector.broadcast %cst_76 : f32 to vector<1x32xf32>
      %206 = arith.select %202, %205, %200 : vector<1x32xi1>, vector<1x32xf32>
      %cst_77 = arith.constant 0.268941432 : f32
      %207 = vector.broadcast %cst_77 : f32 to vector<1x32xf32>
      %208 = arith.mulf %206, %207 : vector<1x32xf32>
      %209 = vector.extract_strided_slice %196 {offsets = [1, 0], sizes = [1, 32], strides = [1, 1]} : vector<8x32xf32> to vector<1x32xf32>
      %210 = arith.addf %208, %209 : vector<1x32xf32>
      %cst_78 = arith.constant 8.000000e-02 : f32
      %211 = vector.broadcast %cst_78 : f32 to vector<1x32xf32>
      %212 = arith.cmpf oge, %210, %211 : vector<1x32xf32>
      %213 = arith.extui %212 : vector<1x32xi1> to vector<1x32xi32>
      %214 = arith.sitofp %213 : vector<1x32xi32> to vector<1x32xf32>
      %cst_79 = arith.constant 0.000000e+00 : f32
      %215 = vector.broadcast %cst_79 : f32 to vector<1x32xf32>
      %216 = arith.select %212, %215, %210 : vector<1x32xi1>, vector<1x32xf32>
      %cst_80 = arith.constant 0.268941432 : f32
      %217 = vector.broadcast %cst_80 : f32 to vector<1x32xf32>
      %218 = arith.mulf %216, %217 : vector<1x32xf32>
      %219 = vector.extract_strided_slice %196 {offsets = [2, 0], sizes = [1, 32], strides = [1, 1]} : vector<8x32xf32> to vector<1x32xf32>
      %220 = arith.addf %218, %219 : vector<1x32xf32>
      %cst_81 = arith.constant 8.000000e-02 : f32
      %221 = vector.broadcast %cst_81 : f32 to vector<1x32xf32>
      %222 = arith.cmpf oge, %220, %221 : vector<1x32xf32>
      %223 = arith.extui %222 : vector<1x32xi1> to vector<1x32xi32>
      %224 = arith.sitofp %223 : vector<1x32xi32> to vector<1x32xf32>
      %cst_82 = arith.constant 0.000000e+00 : f32
      %225 = vector.broadcast %cst_82 : f32 to vector<1x32xf32>
      %226 = arith.select %222, %225, %220 : vector<1x32xi1>, vector<1x32xf32>
      %cst_83 = arith.constant 0.268941432 : f32
      %227 = vector.broadcast %cst_83 : f32 to vector<1x32xf32>
      %228 = arith.mulf %226, %227 : vector<1x32xf32>
      %229 = vector.extract_strided_slice %196 {offsets = [3, 0], sizes = [1, 32], strides = [1, 1]} : vector<8x32xf32> to vector<1x32xf32>
      %230 = arith.addf %228, %229 : vector<1x32xf32>
      %cst_84 = arith.constant 8.000000e-02 : f32
      %231 = vector.broadcast %cst_84 : f32 to vector<1x32xf32>
      %232 = arith.cmpf oge, %230, %231 : vector<1x32xf32>
      %233 = arith.extui %232 : vector<1x32xi1> to vector<1x32xi32>
      %234 = arith.sitofp %233 : vector<1x32xi32> to vector<1x32xf32>
      %cst_85 = arith.constant 0.000000e+00 : f32
      %235 = vector.broadcast %cst_85 : f32 to vector<1x32xf32>
      %236 = arith.select %232, %235, %230 : vector<1x32xi1>, vector<1x32xf32>
      %cst_86 = arith.constant 0.268941432 : f32
      %237 = vector.broadcast %cst_86 : f32 to vector<1x32xf32>
      %238 = arith.mulf %236, %237 : vector<1x32xf32>
      %239 = vector.extract_strided_slice %196 {offsets = [4, 0], sizes = [1, 32], strides = [1, 1]} : vector<8x32xf32> to vector<1x32xf32>
      %240 = arith.addf %238, %239 : vector<1x32xf32>
      %cst_87 = arith.constant 8.000000e-02 : f32
      %241 = vector.broadcast %cst_87 : f32 to vector<1x32xf32>
      %242 = arith.cmpf oge, %240, %241 : vector<1x32xf32>
      %243 = arith.extui %242 : vector<1x32xi1> to vector<1x32xi32>
      %244 = arith.sitofp %243 : vector<1x32xi32> to vector<1x32xf32>
      %cst_88 = arith.constant 0.000000e+00 : f32
      %245 = vector.broadcast %cst_88 : f32 to vector<1x32xf32>
      %246 = arith.select %242, %245, %240 : vector<1x32xi1>, vector<1x32xf32>
      %cst_89 = arith.constant 0.268941432 : f32
      %247 = vector.broadcast %cst_89 : f32 to vector<1x32xf32>
      %248 = arith.mulf %246, %247 : vector<1x32xf32>
      %249 = vector.extract_strided_slice %196 {offsets = [5, 0], sizes = [1, 32], strides = [1, 1]} : vector<8x32xf32> to vector<1x32xf32>
      %250 = arith.addf %248, %249 : vector<1x32xf32>
      %cst_90 = arith.constant 8.000000e-02 : f32
      %251 = vector.broadcast %cst_90 : f32 to vector<1x32xf32>
      %252 = arith.cmpf oge, %250, %251 : vector<1x32xf32>
      %253 = arith.extui %252 : vector<1x32xi1> to vector<1x32xi32>
      %254 = arith.sitofp %253 : vector<1x32xi32> to vector<1x32xf32>
      %cst_91 = arith.constant 0.000000e+00 : f32
      %255 = vector.broadcast %cst_91 : f32 to vector<1x32xf32>
      %256 = arith.select %252, %255, %250 : vector<1x32xi1>, vector<1x32xf32>
      %cst_92 = arith.constant 0.268941432 : f32
      %257 = vector.broadcast %cst_92 : f32 to vector<1x32xf32>
      %258 = arith.mulf %256, %257 : vector<1x32xf32>
      %259 = vector.extract_strided_slice %196 {offsets = [6, 0], sizes = [1, 32], strides = [1, 1]} : vector<8x32xf32> to vector<1x32xf32>
      %260 = arith.addf %258, %259 : vector<1x32xf32>
      %cst_93 = arith.constant 8.000000e-02 : f32
      %261 = vector.broadcast %cst_93 : f32 to vector<1x32xf32>
      %262 = arith.cmpf oge, %260, %261 : vector<1x32xf32>
      %263 = arith.extui %262 : vector<1x32xi1> to vector<1x32xi32>
      %264 = arith.sitofp %263 : vector<1x32xi32> to vector<1x32xf32>
      %cst_94 = arith.constant 0.000000e+00 : f32
      %265 = vector.broadcast %cst_94 : f32 to vector<1x32xf32>
      %266 = arith.select %262, %265, %260 : vector<1x32xi1>, vector<1x32xf32>
      %cst_95 = arith.constant 0.268941432 : f32
      %267 = vector.broadcast %cst_95 : f32 to vector<1x32xf32>
      %268 = arith.mulf %266, %267 : vector<1x32xf32>
      %269 = vector.extract_strided_slice %196 {offsets = [7, 0], sizes = [1, 32], strides = [1, 1]} : vector<8x32xf32> to vector<1x32xf32>
      %270 = arith.addf %268, %269 : vector<1x32xf32>
      %cst_96 = arith.constant 8.000000e-02 : f32
      %271 = vector.broadcast %cst_96 : f32 to vector<1x32xf32>
      %272 = arith.cmpf oge, %270, %271 : vector<1x32xf32>
      %273 = arith.extui %272 : vector<1x32xi1> to vector<1x32xi32>
      %274 = arith.sitofp %273 : vector<1x32xi32> to vector<1x32xf32>
      %cst_97 = arith.constant 0.000000e+00 : f32
      %275 = vector.broadcast %cst_97 : f32 to vector<1x32xf32>
      %276 = arith.select %272, %275, %270 : vector<1x32xi1>, vector<1x32xf32>
      %277 = tpu.concatenate %204, %214, %224, %234, %244, %254, %264, %274 in 0 : vector<1x32xf32>, vector<1x32xf32>, vector<1x32xf32>, vector<1x32xf32>, vector<1x32xf32>, vector<1x32xf32>, vector<1x32xf32>, vector<1x32xf32> -> vector<8x32xf32>
      %c0_98 = arith.constant 0 : index
      %c0_99 = arith.constant 0 : index
      %278 = vector.load %arg9[%c0_98, %c0_99] : memref<32x128xf32, #tpu.memory_space<vmem>>, vector<32x128xf32>
      %cst_100 = arith.constant dense<0.000000e+00> : vector<8x128xf32>
      %279 = tpu.matmul %277, %278, %cst_100 {dimension_numbers = #tpu.dot_dimension_numbers<[1], [0], [0], [1], [0, 0, 1, 1], [], []>} : vector<8x32xf32>, vector<32x128xf32>, vector<8x128xf32> -> vector<8x128xf32>
      %c0_101 = arith.constant 0 : index
      %c0_102 = arith.constant 0 : index
      %280 = vector.load %arg10[%c0_101, %c0_102] : memref<32x128xf32, #tpu.memory_space<vmem>>, vector<32x128xf32>
      %cst_103 = arith.constant dense<0.000000e+00> : vector<8x128xf32>
      %281 = tpu.matmul %arg18, %280, %cst_103 {dimension_numbers = #tpu.dot_dimension_numbers<[1], [0], [0], [1], [0, 0, 1, 1], [], []>} : vector<8x32xf32>, vector<32x128xf32>, vector<8x128xf32> -> vector<8x128xf32>
      %282 = arith.addf %279, %281 : vector<8x128xf32>
      %c0_104 = arith.constant 0 : index
      %c0_105 = arith.constant 0 : index
      %283 = vector.load %arg6[%c0_104, %c0_105] : memref<1x128xf32, #tpu.memory_space<vmem>>, vector<1x128xf32>
      %284 = vector.broadcast %283 : vector<1x128xf32> to vector<8x128xf32>
      %285 = arith.addf %282, %284 : vector<8x128xf32>
      %286 = arith.index_cast %187 : i32 to index
      %c0_106 = arith.constant 0 : index
      %287 = vector.load %arg7[%286, %c0_106] : memref<64x128xf32, #tpu.memory_space<vmem>>, vector<8x128xf32>
      tpu.vector_store %arg7[%286, %c0_106], %285 {strides = array<i32>} : memref<64x128xf32, #tpu.memory_space<vmem>>, vector<8x128xf32>,
      %288 = tpu.concatenate %191, %191, %191 in 1 : vector<8x32xf32>, vector<8x32xf32>, vector<8x32xf32> -> vector<8x96xf32>
      %289 = vector.broadcast %6 : vector<1x96xf32> to vector<8x96xf32>
      %290 = arith.mulf %288, %289 : vector<8x96xf32>
      %291 = arith.mulf %arg15, %10 : vector<1x96xf32>
      %292 = vector.extract_strided_slice %290 {offsets = [0, 0], sizes = [1, 96], strides = [1, 1]} : vector<8x96xf32> to vector<1x96xf32>
      %293 = arith.addf %291, %292 : vector<1x96xf32>
      %294 = arith.cmpf oge, %293, %14 : vector<1x96xf32>
      %295 = arith.extui %294 : vector<1x96xi1> to vector<1x96xi32>
      %296 = arith.sitofp %295 : vector<1x96xi32> to vector<1x96xf32>
      %cst_107 = arith.constant 0.000000e+00 : f32
      %297 = vector.broadcast %cst_107 : f32 to vector<1x96xf32>
      %298 = arith.select %294, %297, %293 : vector<1x96xi1>, vector<1x96xf32>
      %299 = arith.mulf %298, %10 : vector<1x96xf32>
      %300 = vector.extract_strided_slice %290 {offsets = [1, 0], sizes = [1, 96], strides = [1, 1]} : vector<8x96xf32> to vector<1x96xf32>
      %301 = arith.addf %299, %300 : vector<1x96xf32>
      %302 = arith.cmpf oge, %301, %14 : vector<1x96xf32>
      %303 = arith.extui %302 : vector<1x96xi1> to vector<1x96xi32>
      %304 = arith.sitofp %303 : vector<1x96xi32> to vector<1x96xf32>
      %cst_108 = arith.constant 0.000000e+00 : f32
      %305 = vector.broadcast %cst_108 : f32 to vector<1x96xf32>
      %306 = arith.select %302, %305, %301 : vector<1x96xi1>, vector<1x96xf32>
      %307 = arith.mulf %306, %10 : vector<1x96xf32>
      %308 = vector.extract_strided_slice %290 {offsets = [2, 0], sizes = [1, 96], strides = [1, 1]} : vector<8x96xf32> to vector<1x96xf32>
      %309 = arith.addf %307, %308 : vector<1x96xf32>
      %310 = arith.cmpf oge, %309, %14 : vector<1x96xf32>
      %311 = arith.extui %310 : vector<1x96xi1> to vector<1x96xi32>
      %312 = arith.sitofp %311 : vector<1x96xi32> to vector<1x96xf32>
      %cst_109 = arith.constant 0.000000e+00 : f32
      %313 = vector.broadcast %cst_109 : f32 to vector<1x96xf32>
      %314 = arith.select %310, %313, %309 : vector<1x96xi1>, vector<1x96xf32>
      %315 = arith.mulf %314, %10 : vector<1x96xf32>
      %316 = vector.extract_strided_slice %290 {offsets = [3, 0], sizes = [1, 96], strides = [1, 1]} : vector<8x96xf32> to vector<1x96xf32>
      %317 = arith.addf %315, %316 : vector<1x96xf32>
      %318 = arith.cmpf oge, %317, %14 : vector<1x96xf32>
      %319 = arith.extui %318 : vector<1x96xi1> to vector<1x96xi32>
      %320 = arith.sitofp %319 : vector<1x96xi32> to vector<1x96xf32>
      %cst_110 = arith.constant 0.000000e+00 : f32
      %321 = vector.broadcast %cst_110 : f32 to vector<1x96xf32>
      %322 = arith.select %318, %321, %317 : vector<1x96xi1>, vector<1x96xf32>
      %323 = arith.mulf %322, %10 : vector<1x96xf32>
      %324 = vector.extract_strided_slice %290 {offsets = [4, 0], sizes = [1, 96], strides = [1, 1]} : vector<8x96xf32> to vector<1x96xf32>
      %325 = arith.addf %323, %324 : vector<1x96xf32>
      %326 = arith.cmpf oge, %325, %14 : vector<1x96xf32>
      %327 = arith.extui %326 : vector<1x96xi1> to vector<1x96xi32>
      %328 = arith.sitofp %327 : vector<1x96xi32> to vector<1x96xf32>
      %cst_111 = arith.constant 0.000000e+00 : f32
      %329 = vector.broadcast %cst_111 : f32 to vector<1x96xf32>
      %330 = arith.select %326, %329, %325 : vector<1x96xi1>, vector<1x96xf32>
      %331 = arith.mulf %330, %10 : vector<1x96xf32>
      %332 = vector.extract_strided_slice %290 {offsets = [5, 0], sizes = [1, 96], strides = [1, 1]} : vector<8x96xf32> to vector<1x96xf32>
      %333 = arith.addf %331, %332 : vector<1x96xf32>
      %334 = arith.cmpf oge, %333, %14 : vector<1x96xf32>
      %335 = arith.extui %334 : vector<1x96xi1> to vector<1x96xi32>
      %336 = arith.sitofp %335 : vector<1x96xi32> to vector<1x96xf32>
      %cst_112 = arith.constant 0.000000e+00 : f32
      %337 = vector.broadcast %cst_112 : f32 to vector<1x96xf32>
      %338 = arith.select %334, %337, %333 : vector<1x96xi1>, vector<1x96xf32>
      %339 = arith.mulf %338, %10 : vector<1x96xf32>
      %340 = vector.extract_strided_slice %290 {offsets = [6, 0], sizes = [1, 96], strides = [1, 1]} : vector<8x96xf32> to vector<1x96xf32>
      %341 = arith.addf %339, %340 : vector<1x96xf32>
      %342 = arith.cmpf oge, %341, %14 : vector<1x96xf32>
      %343 = arith.extui %342 : vector<1x96xi1> to vector<1x96xi32>
      %344 = arith.sitofp %343 : vector<1x96xi32> to vector<1x96xf32>
      %cst_113 = arith.constant 0.000000e+00 : f32
      %345 = vector.broadcast %cst_113 : f32 to vector<1x96xf32>
      %346 = arith.select %342, %345, %341 : vector<1x96xi1>, vector<1x96xf32>
      %347 = arith.mulf %346, %10 : vector<1x96xf32>
      %348 = vector.extract_strided_slice %290 {offsets = [7, 0], sizes = [1, 96], strides = [1, 1]} : vector<8x96xf32> to vector<1x96xf32>
      %349 = arith.addf %347, %348 : vector<1x96xf32>
      %350 = arith.cmpf oge, %349, %14 : vector<1x96xf32>
      %351 = arith.extui %350 : vector<1x96xi1> to vector<1x96xi32>
      %352 = arith.sitofp %351 : vector<1x96xi32> to vector<1x96xf32>
      %cst_114 = arith.constant 0.000000e+00 : f32
      %353 = vector.broadcast %cst_114 : f32 to vector<1x96xf32>
      %354 = arith.select %350, %353, %349 : vector<1x96xi1>, vector<1x96xf32>
      %355 = tpu.concatenate %296, %304, %312, %320, %328, %336, %344, %352 in 0 : vector<1x96xf32>, vector<1x96xf32>, vector<1x96xf32>, vector<1x96xf32>, vector<1x96xf32>, vector<1x96xf32>, vector<1x96xf32>, vector<1x96xf32> -> vector<8x96xf32>
      scf.yield %354, %276, %355, %191 : vector<1x96xf32>, vector<1x32xf32>, vector<8x96xf32>, vector<8x32xf32>
    }
    %c7_i32_23 = arith.constant 7 : i32
    %c0_24 = arith.constant 0 : index
    %c0_25 = arith.constant 0 : index
    %88 = vector.load %arg8[%c0_24, %c0_25] : memref<96x32xf32, #tpu.memory_space<vmem>>, vector<96x32xf32>
    %cst_26 = arith.constant dense<0.000000e+00> : vector<8x32xf32>
    %89 = tpu.matmul %87#2, %88, %cst_26 {dimension_numbers = #tpu.dot_dimension_numbers<[1], [0], [0], [1], [0, 0, 1, 1], [], []>} : vector<8x96xf32>, vector<96x32xf32>, vector<8x32xf32> -> vector<8x32xf32>
    %c0_27 = arith.constant 0 : index
    %c0_28 = arith.constant 0 : index
    %90 = vector.load %arg3[%c0_27, %c0_28] : memref<1x32xf32, #tpu.memory_space<vmem>>, vector<1x32xf32>
    %91 = vector.broadcast %90 : vector<1x32xf32> to vector<8x32xf32>
    %92 = arith.addf %89, %91 : vector<8x32xf32>
    %cst_29 = arith.constant 0.268941432 : f32
    %93 = vector.broadcast %cst_29 : f32 to vector<1x32xf32>
    %94 = arith.mulf %87#1, %93 : vector<1x32xf32>
    %95 = vector.extract_strided_slice %92 {offsets = [0, 0], sizes = [1, 32], strides = [1, 1]} : vector<8x32xf32> to vector<1x32xf32>
    %96 = arith.addf %94, %95 : vector<1x32xf32>
    %cst_30 = arith.constant 8.000000e-02 : f32
    %97 = vector.broadcast %cst_30 : f32 to vector<1x32xf32>
    %98 = arith.cmpf oge, %96, %97 : vector<1x32xf32>
    %99 = arith.extui %98 : vector<1x32xi1> to vector<1x32xi32>
    %100 = arith.sitofp %99 : vector<1x32xi32> to vector<1x32xf32>
    %cst_31 = arith.constant 0.000000e+00 : f32
    %101 = vector.broadcast %cst_31 : f32 to vector<1x32xf32>
    %102 = arith.select %98, %101, %96 : vector<1x32xi1>, vector<1x32xf32>
    %cst_32 = arith.constant 0.268941432 : f32
    %103 = vector.broadcast %cst_32 : f32 to vector<1x32xf32>
    %104 = arith.mulf %102, %103 : vector<1x32xf32>
    %105 = vector.extract_strided_slice %92 {offsets = [1, 0], sizes = [1, 32], strides = [1, 1]} : vector<8x32xf32> to vector<1x32xf32>
    %106 = arith.addf %104, %105 : vector<1x32xf32>
    %cst_33 = arith.constant 8.000000e-02 : f32
    %107 = vector.broadcast %cst_33 : f32 to vector<1x32xf32>
    %108 = arith.cmpf oge, %106, %107 : vector<1x32xf32>
    %109 = arith.extui %108 : vector<1x32xi1> to vector<1x32xi32>
    %110 = arith.sitofp %109 : vector<1x32xi32> to vector<1x32xf32>
    %cst_34 = arith.constant 0.000000e+00 : f32
    %111 = vector.broadcast %cst_34 : f32 to vector<1x32xf32>
    %112 = arith.select %108, %111, %106 : vector<1x32xi1>, vector<1x32xf32>
    %cst_35 = arith.constant 0.268941432 : f32
    %113 = vector.broadcast %cst_35 : f32 to vector<1x32xf32>
    %114 = arith.mulf %112, %113 : vector<1x32xf32>
    %115 = vector.extract_strided_slice %92 {offsets = [2, 0], sizes = [1, 32], strides = [1, 1]} : vector<8x32xf32> to vector<1x32xf32>
    %116 = arith.addf %114, %115 : vector<1x32xf32>
    %cst_36 = arith.constant 8.000000e-02 : f32
    %117 = vector.broadcast %cst_36 : f32 to vector<1x32xf32>
    %118 = arith.cmpf oge, %116, %117 : vector<1x32xf32>
    %119 = arith.extui %118 : vector<1x32xi1> to vector<1x32xi32>
    %120 = arith.sitofp %119 : vector<1x32xi32> to vector<1x32xf32>
    %cst_37 = arith.constant 0.000000e+00 : f32
    %121 = vector.broadcast %cst_37 : f32 to vector<1x32xf32>
    %122 = arith.select %118, %121, %116 : vector<1x32xi1>, vector<1x32xf32>
    %cst_38 = arith.constant 0.268941432 : f32
    %123 = vector.broadcast %cst_38 : f32 to vector<1x32xf32>
    %124 = arith.mulf %122, %123 : vector<1x32xf32>
    %125 = vector.extract_strided_slice %92 {offsets = [3, 0], sizes = [1, 32], strides = [1, 1]} : vector<8x32xf32> to vector<1x32xf32>
    %126 = arith.addf %124, %125 : vector<1x32xf32>
    %cst_39 = arith.constant 8.000000e-02 : f32
    %127 = vector.broadcast %cst_39 : f32 to vector<1x32xf32>
    %128 = arith.cmpf oge, %126, %127 : vector<1x32xf32>
    %129 = arith.extui %128 : vector<1x32xi1> to vector<1x32xi32>
    %130 = arith.sitofp %129 : vector<1x32xi32> to vector<1x32xf32>
    %cst_40 = arith.constant 0.000000e+00 : f32
    %131 = vector.broadcast %cst_40 : f32 to vector<1x32xf32>
    %132 = arith.select %128, %131, %126 : vector<1x32xi1>, vector<1x32xf32>
    %cst_41 = arith.constant 0.268941432 : f32
    %133 = vector.broadcast %cst_41 : f32 to vector<1x32xf32>
    %134 = arith.mulf %132, %133 : vector<1x32xf32>
    %135 = vector.extract_strided_slice %92 {offsets = [4, 0], sizes = [1, 32], strides = [1, 1]} : vector<8x32xf32> to vector<1x32xf32>
    %136 = arith.addf %134, %135 : vector<1x32xf32>
    %cst_42 = arith.constant 8.000000e-02 : f32
    %137 = vector.broadcast %cst_42 : f32 to vector<1x32xf32>
    %138 = arith.cmpf oge, %136, %137 : vector<1x32xf32>
    %139 = arith.extui %138 : vector<1x32xi1> to vector<1x32xi32>
    %140 = arith.sitofp %139 : vector<1x32xi32> to vector<1x32xf32>
    %cst_43 = arith.constant 0.000000e+00 : f32
    %141 = vector.broadcast %cst_43 : f32 to vector<1x32xf32>
    %142 = arith.select %138, %141, %136 : vector<1x32xi1>, vector<1x32xf32>
    %cst_44 = arith.constant 0.268941432 : f32
    %143 = vector.broadcast %cst_44 : f32 to vector<1x32xf32>
    %144 = arith.mulf %142, %143 : vector<1x32xf32>
    %145 = vector.extract_strided_slice %92 {offsets = [5, 0], sizes = [1, 32], strides = [1, 1]} : vector<8x32xf32> to vector<1x32xf32>
    %146 = arith.addf %144, %145 : vector<1x32xf32>
    %cst_45 = arith.constant 8.000000e-02 : f32
    %147 = vector.broadcast %cst_45 : f32 to vector<1x32xf32>
    %148 = arith.cmpf oge, %146, %147 : vector<1x32xf32>
    %149 = arith.extui %148 : vector<1x32xi1> to vector<1x32xi32>
    %150 = arith.sitofp %149 : vector<1x32xi32> to vector<1x32xf32>
    %cst_46 = arith.constant 0.000000e+00 : f32
    %151 = vector.broadcast %cst_46 : f32 to vector<1x32xf32>
    %152 = arith.select %148, %151, %146 : vector<1x32xi1>, vector<1x32xf32>
    %cst_47 = arith.constant 0.268941432 : f32
    %153 = vector.broadcast %cst_47 : f32 to vector<1x32xf32>
    %154 = arith.mulf %152, %153 : vector<1x32xf32>
    %155 = vector.extract_strided_slice %92 {offsets = [6, 0], sizes = [1, 32], strides = [1, 1]} : vector<8x32xf32> to vector<1x32xf32>
    %156 = arith.addf %154, %155 : vector<1x32xf32>
    %cst_48 = arith.constant 8.000000e-02 : f32
    %157 = vector.broadcast %cst_48 : f32 to vector<1x32xf32>
    %158 = arith.cmpf oge, %156, %157 : vector<1x32xf32>
    %159 = arith.extui %158 : vector<1x32xi1> to vector<1x32xi32>
    %160 = arith.sitofp %159 : vector<1x32xi32> to vector<1x32xf32>
    %cst_49 = arith.constant 0.000000e+00 : f32
    %161 = vector.broadcast %cst_49 : f32 to vector<1x32xf32>
    %162 = arith.select %158, %161, %156 : vector<1x32xi1>, vector<1x32xf32>
    %cst_50 = arith.constant 0.268941432 : f32
    %163 = vector.broadcast %cst_50 : f32 to vector<1x32xf32>
    %164 = arith.mulf %162, %163 : vector<1x32xf32>
    %165 = vector.extract_strided_slice %92 {offsets = [7, 0], sizes = [1, 32], strides = [1, 1]} : vector<8x32xf32> to vector<1x32xf32>
    %166 = arith.addf %164, %165 : vector<1x32xf32>
    %cst_51 = arith.constant 8.000000e-02 : f32
    %167 = vector.broadcast %cst_51 : f32 to vector<1x32xf32>
    %168 = arith.cmpf oge, %166, %167 : vector<1x32xf32>
    %169 = arith.extui %168 : vector<1x32xi1> to vector<1x32xi32>
    %170 = arith.sitofp %169 : vector<1x32xi32> to vector<1x32xf32>
    %cst_52 = arith.constant 0.000000e+00 : f32
    %171 = vector.broadcast %cst_52 : f32 to vector<1x32xf32>
    %172 = arith.select %168, %171, %166 : vector<1x32xi1>, vector<1x32xf32>
    %173 = tpu.concatenate %100, %110, %120, %130, %140, %150, %160, %170 in 0 : vector<1x32xf32>, vector<1x32xf32>, vector<1x32xf32>, vector<1x32xf32>, vector<1x32xf32>, vector<1x32xf32>, vector<1x32xf32>, vector<1x32xf32> -> vector<8x32xf32>
    %c0_53 = arith.constant 0 : index
    %c0_54 = arith.constant 0 : index
    %174 = vector.load %arg9[%c0_53, %c0_54] : memref<32x128xf32, #tpu.memory_space<vmem>>, vector<32x128xf32>
    %cst_55 = arith.constant dense<0.000000e+00> : vector<8x128xf32>
    %175 = tpu.matmul %173, %174, %cst_55 {dimension_numbers = #tpu.dot_dimension_numbers<[1], [0], [0], [1], [0, 0, 1, 1], [], []>} : vector<8x32xf32>, vector<32x128xf32>, vector<8x128xf32> -> vector<8x128xf32>
    %c0_56 = arith.constant 0 : index
    %c0_57 = arith.constant 0 : index
    %176 = vector.load %arg10[%c0_56, %c0_57] : memref<32x128xf32, #tpu.memory_space<vmem>>, vector<32x128xf32>
    %cst_58 = arith.constant dense<0.000000e+00> : vector<8x128xf32>
    %177 = tpu.matmul %87#3, %176, %cst_58 {dimension_numbers = #tpu.dot_dimension_numbers<[1], [0], [0], [1], [0, 0, 1, 1], [], []>} : vector<8x32xf32>, vector<32x128xf32>, vector<8x128xf32> -> vector<8x128xf32>
    %178 = arith.addf %175, %177 : vector<8x128xf32>
    %c0_59 = arith.constant 0 : index
    %c0_60 = arith.constant 0 : index
    %179 = vector.load %arg6[%c0_59, %c0_60] : memref<1x128xf32, #tpu.memory_space<vmem>>, vector<1x128xf32>
    %180 = vector.broadcast %179 : vector<1x128xf32> to vector<8x128xf32>
    %181 = arith.addf %178, %180 : vector<8x128xf32>
    %c56 = arith.constant 56 : index
    %c0_61 = arith.constant 0 : index
    %182 = vector.load %arg7[%c56, %c0_61] : memref<64x128xf32, #tpu.memory_space<vmem>>, vector<8x128xf32>
    tpu.vector_store %arg7[%c56, %c0_61], %181 {strides = array<i32>} : memref<64x128xf32, #tpu.memory_space<vmem>>, vector<8x128xf32>,
    %c0_62 = arith.constant 0 : index
    %c0_63 = arith.constant 0 : index
    %183 = vector.load %arg12[%c0_62, %c0_63] : memref<1x96xf32, #tpu.memory_space<vmem>>, vector<1x96xf32>
    tpu.vector_store %arg12[%c0_62, %c0_63], %87#0 {strides = array<i32>} : memref<1x96xf32, #tpu.memory_space<vmem>>, vector<1x96xf32>,
    %c0_64 = arith.constant 0 : index
    %c0_65 = arith.constant 0 : index
    %184 = vector.load %arg13[%c0_64, %c0_65] : memref<1x32xf32, #tpu.memory_space<vmem>>, vector<1x32xf32>
    tpu.vector_store %arg13[%c0_64, %c0_65], %172 {strides = array<i32>} : memref<1x32xf32, #tpu.memory_space<vmem>>, vector<1x32xf32>,
    return
  }
  func.func @transform_0(%arg0: i32) -> (i32, i32) {
    %c0_i32 = arith.constant 0 : i32
    %c0_i32_0 = arith.constant 0 : i32
    return %arg0, %c0_i32 : i32, i32
  }
  func.func @transform_2(%arg0: i32) -> (i32, i32) {
    %c0_i32 = arith.constant 0 : i32
    %c0_i32_0 = arith.constant 0 : i32
    %c0_i32_1 = arith.constant 0 : i32
    return %c0_i32, %c0_i32_0 : i32, i32
  }
  func.func @transform_5(%arg0: i32) -> (i32, i32) {
    %c0_i32 = arith.constant 0 : i32
    %c0_i32_0 = arith.constant 0 : i32
    %c0_i32_1 = arith.constant 0 : i32
    return %c0_i32, %c0_i32_0 : i32, i32
  }
  func.func @transform_6(%arg0: i32) -> (i32, i32) {
    %c0_i32 = arith.constant 0 : i32
    %c0_i32_0 = arith.constant 0 : i32
    return %arg0, %c0_i32 : i32, i32
  }
}

</mosaic_0001>

<bundles_post_ra>
// kernel: tpu_custom_call.1
= control target key start
LH: loop header
LB: loop body
LE: loop exit
PB: predicated region body
PF: predicated region fallthrough
CT: control target
= control target key end

     0   :  { %11 = vsyncpa [#allocation9], 0  ;;  %vm2284_vm0 = vcmask 778240   ;;  %vm2282_vm1 = vcmask 253952   ;;  %v1846_v1 = vmov 0.0   ;;  %s2275_s0 = inlined_call_operand.vmem [shape: f32[64,32], index: 0, kind: input, shape index: {}]   ;;  %s2276_s1 = inlined_call_operand.vmem [shape: f32[96,32], index: 1, kind: input, shape index: {}]   ;;  %s2277_s2 = inlined_call_operand.vmem [shape: f32[1,32], index: 2, kind: input, shape index: {}]   ;;  %s2278_s3 = inlined_call_operand.vmem [shape: f32[32,128], index: 3, kind: input, shape index: {}]   ;;  %s2279_s4 = inlined_call_operand.vmem [shape: f32[32,128], index: 4, kind: input, shape index: {}]   ;;  %s2280_s5 = inlined_call_operand.vmem [shape: f32[1,128], index: 5, kind: input, shape index: {}]   ;;  %s2281_s6 = inlined_call_operand.hbm [shape: f32[64,128], index: 6, kind: output, shape index: {}]  }
   0x1   :  { %v58_v0 = vld [vmem:[%s2276_s1] sm:$0xff]  ;;  %23 = vst.msk [vmem:[#allocation6] sm:$0x1] %vm2284_vm0, %v1846_v1  ;;  %v60_v2 = vld [vmem:[%s2276_s1 + $0x8] sm:$0xff]  ;;  %v62_v3 = vld [vmem:[%s2276_s1 + $0x10] sm:$0xff] }
   0x2   :  { %25 = vst.msk [vmem:[#allocation7] sm:$0x1] %vm2282_vm1, %v1846_v1  ;;  %59 = vst [vmem:[#allocation2] sm:$0xff] %v58_v0  ;;  %v64_v4 = vld [vmem:[%s2276_s1 + $0x18] sm:$0xff]  ;;  %v66_v5 = vld [vmem:[%s2276_s1 + $0x20] sm:$0xff] }
   0x3   :  { %61 = vst [vmem:[#allocation2 + $0x8] sm:$0xff] %v60_v2  ;;  %63 = vst [vmem:[#allocation2 + $0x10] sm:$0xff] %v62_v3  ;;  %v68_v6 = vld [vmem:[%s2276_s1 + $0x28] sm:$0xff]  ;;  %v70_v7 = vld [vmem:[%s2276_s1 + $0x30] sm:$0xff] }
   0x4   :  { %65 = vst [vmem:[#allocation2 + $0x18] sm:$0xff] %v64_v4  ;;  %67 = vst [vmem:[#allocation2 + $0x20] sm:$0xff] %v66_v5  ;;  %v72_v8 = vld [vmem:[%s2276_s1 + $0x38] sm:$0xff]  ;;  %v74_v9 = vld [vmem:[%s2276_s1 + $0x40] sm:$0xff] }
   0x5   :  { %69 = vst [vmem:[#allocation2 + $0x28] sm:$0xff] %v68_v6  ;;  %71 = vst [vmem:[#allocation2 + $0x30] sm:$0xff] %v70_v7  ;;  %v76_v10 = vld [vmem:[%s2276_s1 + $0x48] sm:$0xff]  ;;  %v78_v11 = vld [vmem:[%s2276_s1 + $0x50] sm:$0xff] }
   0x6   :  { %73 = vst [vmem:[#allocation2 + $0x38] sm:$0xff] %v72_v8  ;;  %75 = vst [vmem:[#allocation2 + $0x40] sm:$0xff] %v74_v9  ;;  %v80_v12 = vld [vmem:[%s2276_s1 + $0x58] sm:$0xff] }
   0x7   :  { %77 = vst [vmem:[#allocation2 + $0x48] sm:$0xff] %v76_v10  ;;  %79 = vst [vmem:[#allocation2 + $0x50] sm:$0xff] %v78_v11 }
   0x8   :  { %81 = vst [vmem:[#allocation2 + $0x58] sm:$0xff] %v80_v12 }
   0x9   :  { %89 = vsyncadd [#allocation5], 1536  ;;  %v123_v13 = vld [vmem:[%s2278_s3] sm:$0xff]  ;;  %v125_v14 = vld [vmem:[%s2278_s3 + $0x8] sm:$0xff] }
   0xa   :  { %124 = vst [vmem:[#allocation3] sm:$0xff] %v123_v13  ;;  %126 = vst [vmem:[#allocation3 + $0x8] sm:$0xff] %v125_v14  ;;  %v127_v15 = vld [vmem:[%s2278_s3 + $0x10] sm:$0xff]  ;;  %v129_v16 = vld [vmem:[%s2278_s3 + $0x18] sm:$0xff] }
   0xb   :  { %128 = vst [vmem:[#allocation3 + $0x10] sm:$0xff] %v127_v15  ;;  %130 = vst [vmem:[#allocation3 + $0x18] sm:$0xff] %v129_v16 }
   0xc   :  { %138 = vsyncadd [#allocation5 + $0x1], 512  ;;  %v172_v17 = vld [vmem:[%s2279_s4] sm:$0xff]  ;;  %v174_v18 = vld [vmem:[%s2279_s4 + $0x8] sm:$0xff] }
   0xd   :  { %173 = vst [vmem:[#allocation4] sm:$0xff] %v172_v17  ;;  %175 = vst [vmem:[#allocation4 + $0x8] sm:$0xff] %v174_v18  ;;  %v176_v19 = vld [vmem:[%s2279_s4 + $0x10] sm:$0xff]  ;;  %v178_v20 = vld [vmem:[%s2279_s4 + $0x18] sm:$0xff] }
   0xe   :  { %177 = vst [vmem:[#allocation4 + $0x10] sm:$0xff] %v176_v19  ;;  %179 = vst [vmem:[#allocation4 + $0x18] sm:$0xff] %v178_v20 }
   0xf   :  { %187 = vsyncadd [#allocation5 + $0x2], 512 }
  0x10   :  { %1818 = dma.done.wait [#allocation5], 1536 }
  0x11   :  { %1819 = vsyncadd [#allocation5], 4294965760 }
  0x12   :  { %1820 = dma.done.wait [#allocation5 + $0x1], 512 }
  0x13   :  { %1821 = vsyncadd [#allocation5 + $0x1], 4294966784 }
  0x14   :  { %1822 = dma.done.wait [#allocation5 + $0x2], 512 }
  0x15   :  { %1823 = vsyncadd [#allocation5 + $0x2], 4294966784  ;;  %v1962_v21 = vld [vmem:[#allocation7] sm:$0x1]   ;;  %s1847_s13 = smov 32   ;;  %s1848_s4 = smov 64   ;;  %v215_v23 = vlaneseq }
  0x16   :  { %v1967_v22 = vld [vmem:[%s2275_s0] sm:$0xff]   ;;  %vm196_vm2 = vcmask 261120   ;;  %v1849_v25 = vmov 0.7310586   ;;  %vm198_vm3 = vcmask 523264   ;;  %vm367_vm10 = vcmask 1040384  }
  0x17   :  { %207 = vrot.lane.b32.xlu0 %v1967_v22, %s1847_s13  ;;  %v216_v24 = vshrl.u32 %v215_v23, 7  ;;  %v197_v26 = vsel %vm196_vm2, 0.8175745, %v1849_v25  ;;  %v1850_v27 = vmov 1966171168   ;;  %vm369_vm12 = vcmask 1041408  }
  0x18   :  { %v229_v28 = vunpack.c.l.s4 %v1850_v27  ;;  %v1851_v29 = vmov 0.26894143   ;;  %v199_v32 = vsel %vm198_vm3, %v197_v26, 0.6899745  ;;  %v205_v36 = vld [vmem:[#allocation6] sm:$0x1] }
  0x19   :  { %v200_v30 = vsel %vm196_vm2, 0.18242553, %v1851_v29  ;;  %v1973_v31 = vsub.s32 0, %v216_v24  ;;  %v1852_v38 = vmov 0.08   ;;  %vm371_vm13 = vcmask 1042432  }
  0x1a   :  { %v230_v34 = vunpack.c.0.s8 %v229_v28  ;;  %v1977_v35 = vsel %vm198_vm3, %v200_v30, 0.3100255  ;;  %v202_v39 = vsel %vm196_vm2, 0.14, %v1852_v38  ;;  %vm373_vm14 = vcmask 1043456   ;;  %s2062_s14 = smov 1  }
  0x1b   :  { %210 = vrot.lane.b32.xlu0 %v1967_v22, %s1848_s4  ;;  %v1980_v37 = vrot.slane %v199_v32, %v1973_v31  ;;  %v220_v41 = vmul.f32 %v205_v36, %v1977_v35  ;;  %v1991_v46 = vsel %vm198_vm3, %v202_v39, 0.06  ;;  %vm375_vm15 = vcmask 1044480  }
  0x1c   :  { %v1986_v42 = vsub.s32 %v230_v34, %v216_v24 }
  0x89   :  { %v208_v33 = vpop.permute.xlu0 %207 }
  0x8a   :  { %v213_v40 = vsel %vm196_vm2, %v1967_v22, %v208_v33 }
  0x8d   :  { %v211_v43 = vpop.permute.xlu0 %210 }
  0x8e   :  { %v214_v44 = vsel %vm198_vm3, %v213_v40, %v211_v43 }
  0x8f   :  { %v219_v45 = vmul.f32 %v1980_v37, %v214_v44 }
  0x91   :  { %v221_v47 = vadd.f32 %v220_v41, %v219_v45  ;;  %v234_v48 = vrot.slane %v219_v45, %v1986_v42  ;;  %v273_v59 = vcombine.high %v219_v45, %v219_v45 }
  0x93   :  { %vm222_vm4 = vcmp.ge.f32.partialorder %v221_v47, %v1991_v46  ;;  %v235_v49 = vcombine.high %v234_v48, %v234_v48  ;;  %v242_v53 = vrot.slane %v234_v48, %v1986_v42  ;;  %v280_v0 = vrot.slane %v273_v59, %v1986_v42 }
  0x94   :  { %v225_v50 = vsel %vm222_vm4, 0.0, %v221_v47  ;;  %v1467_v29 = vsel %vm222_vm4, 1.0, %v1846_v1 }
  0x95   :  { %v226_v51 = vmul.f32 %v225_v50, %v1977_v35  ;;  %v249_v52 = vrot.slane %v235_v49, %v1986_v42  ;;  %v257_v57 = vcombine.high %v242_v53, %v242_v53  ;;  %v287_v4 = vrot.slane %v280_v0, %v1986_v42 }
  0x96   :  { %v295_v6 = vcombine.high %v280_v0, %v280_v0 }
  0x97   :  { %v251_v54 = vadd.f32 %v249_v52, %v226_v51  ;;  %v265_v62 = vcombine.high %v249_v52, %v249_v52  ;;  %v310_v13 = vcombine.high %v287_v4, %v287_v4 }
  0x98   :  { %v302_v9 = vrot.slane %v295_v6, %v1986_v42 }
  0x99   :  { %vm252_vm5 = vcmp.ge.f32.partialorder %v251_v54, %v1991_v46 }
  0x9a   :  { %v255_v55 = vsel %vm252_vm5, 0.0, %v251_v54  ;;  %v1468_v14 = vsel %vm252_vm5, 1.0, %v1846_v1  ;;  %v318_v27 = vcombine.high %v302_v9, %v302_v9  ;;  %vm377_vm5 = vcmask 1045504  }
  0x9b   :  { %v256_v56 = vmul.f32 %v255_v55, %v1977_v35  ;;  %v329_v19 = vrot.slane %v1468_v14, %v1973_v31 }
  0x9d   :  { %v259_v58 = vadd.f32 %v257_v57, %v256_v56  ;;  %v368_v34 = vsel %vm367_vm10, %v1467_v29, %v329_v19 }
  0x9f   :  { %vm260_vm6 = vcmp.ge.f32.partialorder %v259_v58, %v1991_v46 }
  0xa0   :  { %v263_v60 = vsel %vm260_vm6, 0.0, %v259_v58  ;;  %v1469_v15 = vsel %vm260_vm6, 1.0, %v1846_v1 }
  0xa1   :  { %v264_v61 = vmul.f32 %v263_v60, %v1977_v35  ;;  %v335_v24 = vrot.slane %v1469_v15, %v1973_v31 }
  0xa3   :  { %v267_v63 = vadd.f32 %v265_v62, %v264_v61  ;;  %v370_v38 = vsel %vm369_vm12, %v368_v34, %v335_v24 }
  0xa5   :  { %vm268_vm7 = vcmp.ge.f32.partialorder %v267_v63, %v1991_v46 }
  0xa6   :  { %v271_v2 = vsel %vm268_vm7, 0.0, %v267_v63  ;;  %v1470_v17 = vsel %vm268_vm7, 1.0, %v1846_v1  ;;  %vm379_vm7 = vcmask 1046528  }
  0xa7   :  { %v272_v3 = vmul.f32 %v271_v2, %v1977_v35  ;;  %v341_v28 = vrot.slane %v1470_v17, %v1973_v31 }
  0xa9   :  { %v289_v5 = vadd.f32 %v287_v4, %v272_v3  ;;  %v372_v39 = vsel %vm371_vm13, %v370_v38, %v341_v28 }
  0xab   :  { %vm290_vm8 = vcmp.ge.f32.partialorder %v289_v5, %v1991_v46 }
  0xac   :  { %v293_v7 = vsel %vm290_vm8, 0.0, %v289_v5  ;;  %v1471_v18 = vsel %vm290_vm8, 1.0, %v1846_v1 }
  0xad   :  { %v294_v8 = vmul.f32 %v293_v7, %v1977_v35  ;;  %v347_v30 = vrot.slane %v1471_v18, %v1973_v31 }
  0xaf   :  { %v304_v10 = vadd.f32 %v302_v9, %v294_v8  ;;  %v374_v43 = vsel %vm373_vm14, %v372_v39, %v347_v30 }
  0xb1   :  { %vm305_vm9 = vcmp.ge.f32.partialorder %v304_v10, %v1991_v46 }
  0xb2   :  { %v308_v11 = vsel %vm305_vm9, 0.0, %v304_v10  ;;  %v1472_v20 = vsel %vm305_vm9, 1.0, %v1846_v1 }
  0xb3   :  { %v309_v12 = vmul.f32 %v308_v11, %v1977_v35  ;;  %v353_v33 = vrot.slane %v1472_v20, %v1973_v31 }
  0xb5   :  { %v312_v16 = vadd.f32 %v310_v13, %v309_v12  ;;  %v376_v45 = vsel %vm375_vm15, %v374_v43, %v353_v33 }
  0xb7   :  { %vm313_vm11 = vcmp.ge.f32.partialorder %v312_v16, %v1991_v46 }
  0xb8   :  { %v316_v23 = vsel %vm313_vm11, 0.0, %v312_v16  ;;  %v1473_v25 = vsel %vm313_vm11, 1.0, %v1846_v1 }
  0xb9   :  { %v317_v26 = vmul.f32 %v316_v23, %v1977_v35  ;;  %v359_v36 = vrot.slane %v1473_v25, %v1973_v31 }
  0xbb   :  { %v320_v32 = vadd.f32 %v318_v27, %v317_v26  ;;  %v378_v47 = vsel %vm377_vm5, %v376_v45, %v359_v36 }
  0xbd   :  { %vm321_vm6 = vcmp.ge.f32.partialorder %v320_v32, %v1991_v46 }
  0xbe   :  { %v1474_v40 = vsel %vm321_vm6, 1.0, %v1846_v1  ;;  %v324_v41 = vsel %vm321_vm6, 0.0, %v320_v32  }
  0xbf   :  { %v365_v44 = vrot.slane %v1474_v40, %v1973_v31 }
  0xc1   :  { %v380_v48 = vsel %vm379_vm7, %v378_v47, %v365_v44  }
  0xc2 LB: > { %v397_v49 = vld [vmem:[#allocation2] sm:$0xff]  ;;  %v398_v50 = vld [vmem:[#allocation2 + $0x8] sm:$0xff]  ;;  %v399_v51 = vld [vmem:[#allocation2 + $0x10] sm:$0xff]  ;;  %v1853_v52 = vmov 0.0|0.0   ;;  %vm1854_vm4 = vmmov 0   ;;  %v1855_v55 = vmov 0.0   ;;  %s1844_s14 = sphi %s2062_s14, %s387_s14   ;;  %v1840_v41 = vphi %v324_v41, %v2290_v41   ;;  %v1836_v21 = vphi %v1962_v21, %v2289_v21   ;;  %v1832_v48 = vphi %v380_v48, %v2288_v48   ;;  %v1828_v22 = vphi %v1967_v22, %v2287_v22  }
  0xc3   : > { %1659 = vmatprep.subr.bf16.mxu0 %v1853_v52  ;;  %v1660_v53 = vpack.c.bf16 %v398_v50, %v397_v49  ;;  %v400_v54 = vld [vmem:[#allocation2 + $0x18] sm:$0xff]  ;;  %1585 = vmatprep.mubr.msk.f32.mxu0 %vm1854_vm4, %v1855_v55  ;;  %v401_v57 = vld [vmem:[#allocation2 + $0x20] sm:$0xff]  ;;  %v402_v58 = vld [vmem:[#allocation2 + $0x28] sm:$0xff]  ;;  %vm2283_vm8 = vcmask 785408   ;;  %s1477_s15 = sshll.u32 %s1844_s14, 3  ;;  %s1856_s19 = smov 32  }
  0xc4   : > { %1677 = vmatprep.subr.bf16.mxu1 %v1853_v52  ;;  %1596 = vmatprep.mubr.msk.f32.mxu1 %vm1854_vm4, %v1855_v55  ;;  %v1663_v56 = vpack.c.bf16 %v400_v54, %v399_v51  ;;  %v1666_v59 = vpack.c.bf16 %v402_v58, %v401_v57  ;;  %v403_v60 = vld [vmem:[#allocation2 + $0x30] sm:$0xff]  ;;  %v404_v61 = vld [vmem:[#allocation2 + $0x38] sm:$0xff]  ;;  %v405_v63 = vld [vmem:[#allocation2 + $0x40] sm:$0xff]  ;;  %s395_s18 = scalar_lea.vmem %s2275_s0, %s1477_s15  ;;  %s1857_s20 = smov 64   ;;  %v490_v20 = vmul.f32 0.26894143, %v1836_v21 }
  0xc5   : > { %1661 = vmatpush3.bf16.msra.mxu0 %v1660_v53  ;;  %v1669_v62 = vpack.c.bf16 %v404_v61, %v403_v60  ;;  %v406_v0 = vld [vmem:[#allocation2 + $0x48] sm:$0xff]  ;;  %v407_v3 = vld [vmem:[#allocation2 + $0x50] sm:$0xff]  ;;  %v408_v4 = vld [vmem:[#allocation2 + $0x58] sm:$0xff]  ;;  %s1475_s23 = sadd.s32 4294967295, %s1844_s14  ;;  %s387_s14 = sadd.s32 1, %s1844_s14  }
  0xc6   : > { %1662 = vmatprep.subr.bf16.mxu0 %v1853_v52  ;;  %v1672_v2 = vpack.c.bf16 %v406_v0, %v405_v63  ;;  %v1675_v5 = vpack.c.bf16 %v408_v4, %v407_v3  ;;  %v648_v6 = vld [vmem:[#allocation4] sm:$0xff]  ;;  %v649_v7 = vld [vmem:[#allocation4 + $0x8] sm:$0xff]  ;;  %v650_v8 = vld [vmem:[#allocation4 + $0x10] sm:$0xff]  ;;  %s1476_s24 = sshll.u32 %s1475_s23, 3  ;;  %p384_p0 = scmp.ge.s32.totalorder %s387_s14, 8  }
  0xc7   : > { %v1678_v9 = vpack.c.bf16 %v649_v7, %v648_v6  ;;  %v651_v10 = vld [vmem:[#allocation4 + $0x18] sm:$0xff]  ;;  %v644_v12 = vld [vmem:[#allocation3] sm:$0xff]  ;;  %v645_v13 = vld [vmem:[#allocation3 + $0x8] sm:$0xff]  ;;  %s806_s27 = scalar_lea.vmem [#allocation8], %s1476_s24  ;;  %s1860_s29 = smov (%p384_p0), [#allocation8]  }
  0xc8   : > { %v1681_v11 = vpack.c.bf16 %v651_v10, %v650_v8  ;;  %v1684_v14 = vpack.c.bf16 %v645_v13, %v644_v12  ;;  %v646_v15 = vld [vmem:[#allocation3 + $0x10] sm:$0xff]  ;;  %v647_v16 = vld [vmem:[#allocation3 + $0x18] sm:$0xff]  ;;  %v1478_v19 = vld [vmem:[%s2277_s2] ss:$0 sm:$0xff]  ;;  %s1391_s30 = sshll.u32 (%p384_p0), %s1860_s29, 4  ;;  %s1392_s30 = int_to_ptr.vmem [resolvable:$true] %s1391_s30 }
  0xc9   : > { %1664 = vmatpush3.bf16.msra.mxu0 %v1663_v56  ;;  %1679 = vmatpush3.bf16.msra.mxu1 %v1678_v9  ;;  %v1687_v17 = vpack.c.bf16 %v647_v16, %v646_v15  ;;  %s1776_s7 = scalar_lea.vmem (%p384_p0), %s1392_s30, 1024  ;;  %p1781_p2 = scmp.lt.s32.totalorder (%p384_p0), %s1392_s30, %s1392_s30 }
  0xca   : > { %1665 = vmatprep.subr.bf16.mxu0 %v1853_v52  ;;  %1680 = vmatprep.subr.bf16.mxu1 %v1853_v52  ;;  %p1777_p1 = scmp.ne.s32.totalorder (%p384_p0), %s1392_s30, %s1776_s7  ;;  %p1782_p3 = scmp.lt.s32.totalorder (%p384_p0), %s1776_s7, %s1776_s7 }
  0xcc   :  { %p1783_p4 = por (%p384_p0), %p1782_p3, %p1781_p2 }
  0xcd   : > { %1667 = vmatpush3.bf16.msra.mxu0 %v1666_v59  ;;  %1682 = vmatpush3.bf16.msra.mxu1 %v1681_v11 }
  0xce   : > { %1668 = vmatprep.subr.bf16.mxu0 %v1853_v52  ;;  %1683 = vmatprep.subr.bf16.mxu1 %v1853_v52  ;;  %p1784_p5 = pnand (%p384_p0), %p1783_p4, %p1777_p1 }
  0xd0   : > { %1597 = vmatmul.mubr.msk.f32.vlgmr.msra.gmra.mrb[0].mxu1 %vm196_vm2, %v1828_v22  ;;  %v2087_v22 = vld [vmem:[%s395_s18] sm:$0xff]  }
  0xd1   : > { %1670 = vmatpush3.bf16.msra.mxu0 %v1669_v62  ;;  %1685 = vmatpush3.bf16.msra.mxu1 %v1684_v14  ;;  %v2285_v18 = vmov %v2087_v22 }
  0xd2   : > { %1671 = vmatprep.subr.bf16.mxu0 %v1853_v52  ;;  %1607 = vmatprep.mubr.msk.f32.mxu1 %vm1854_vm4, %v1855_v55 }
  0xd3   : > { %1686 = vmatprep.subr.bf16.mxu1 %v1853_v52  ;;  %809 = vrot.lane.b32.xlu0 %v2285_v18, %s1856_s19 }
  0xd5   : > { %1673 = vmatpush3.bf16.msra.mxu0 %v1672_v2  ;;  %1688 = vmatpush3.bf16.msra.mxu1 %v1687_v17 }
  0xd6   : > { %1674 = vmatprep.subr.bf16.mxu0 %v1853_v52 }
  0xd7   : > { %812 = vrot.lane.b32.xlu0 %v2285_v18, %s1857_s20 }
  0xd9   : > { %1676 = vmatpush3.bf16.msra.mxu0 %v1675_v5 }
  0xdc   : > { %1586 = vmatmul.mubr.msk.f32.vlgmr.msra.gmra.mrb[0].mxu0 %vm2283_vm8, %v1832_v48 }
 0x145   : > { %v810_v11 = vpop.permute.xlu0 %809 }
 0x146   : > { %v815_v17 = vsel %vm196_vm2, %v2285_v18, %v810_v11 }
 0x1af   : > { %v486_v23 = vpop.f32.mrb[0].mxu0 }
 0x1b0   : > { %v487_v24 = vadd.f32 %v1478_v19, %v486_v23  ;;  %v1587_v25 = vpop.f32.mrb[1].mxu0 }
 0x1b1   : > { %v818_v25 = vmul.f32 %v1840_v41, %v1977_v35 }
 0x1b2   : > { %v491_v26 = vadd.f32 %v490_v20, %v487_v24  ;;  %v504_v27 = vrot.slane %v487_v24, %v1986_v42  ;;  %v543_v39 = vcombine.high %v487_v24, %v487_v24  ;;  %v813_v24 = vpop.permute.xlu0 %812 }
 0x1b4   : > { %vm492_vm9 = vcmp.ge.f32.partialorder %v491_v26, 0.08  ;;  %v505_v22 = vcombine.high %v504_v27, %v504_v27  ;;  %v512_v32 = vrot.slane %v504_v27, %v1986_v42  ;;  %v550_v47 = vrot.slane %v543_v39, %v1986_v42 }
 0x1b5   : > { %v495_v28 = vsel %vm492_vm9, 0.0, %v491_v26  ;;  %v1480_v12 = vsel %vm492_vm9, 1.0, %v1855_v55 }
 0x1b6   : > { %v496_v29 = vmul.f32 0.26894143, %v495_v28  ;;  %v519_v30 = vrot.slane %v505_v22, %v1986_v42  ;;  %v527_v36 = vcombine.high %v512_v32, %v512_v32  ;;  %v557_v50 = vrot.slane %v550_v47, %v1986_v42 }
 0x1b7   : > { %v565_v52 = vcombine.high %v550_v47, %v550_v47  ;;  %v816_v28 = vsel %vm198_vm3, %v815_v17, %v813_v24  ;;  %vm2292_vm3 = vcmask (%p384_p0), 785408  }
 0x1b8   : > { %v521_v33 = vadd.f32 %v519_v30, %v496_v29  ;;  %v535_v44 = vcombine.high %v519_v30, %v519_v30  ;;  %v580_v59 = vcombine.high %v557_v50, %v557_v50  ;;  %v817_v32 = vmul.f32 %v816_v28, %v1980_v37  ;;  %v977_v37 = vld [vmem:[#allocation2 + $0x28] sm:$0xff] (%p384_p0) }
 0x1b9   : > { %v572_v54 = vrot.slane %v565_v52, %v1986_v42 }
 0x1ba   : > { %vm522_vm11 = vcmp.ge.f32.partialorder %v521_v33, 0.08  ;;  %v832_v41 = vrot.slane %v817_v32, %v1986_v42 }
 0x1bb   : > { %v525_v34 = vsel %vm522_vm11, 0.0, %v521_v33  ;;  %v1481_v61 = vsel %vm522_vm11, 1.0, %v1855_v55  ;;  %v588_v7 = vcombine.high %v572_v54, %v572_v54 }
 0x1bc   : > { %v526_v21 = vmul.f32 0.26894143, %v525_v34  ;;  %v599_v2 = vrot.slane %v1481_v61, %v1973_v31 }
 0x1be   : > { %v529_v38 = vadd.f32 %v527_v36, %v526_v21  ;;  %v637_v14 = vsel %vm367_vm10, %v1480_v12, %v599_v2  ;;  %v819_v36 = vadd.f32 %v818_v25, %v817_v32 }
 0x1c0   : > { %vm530_vm6 = vcmp.ge.f32.partialorder %v529_v38, 0.08 }
 0x1c1   : > { %v533_v40 = vsel %vm530_vm6, 0.0, %v529_v38  ;;  %v1482_v62 = vsel %vm530_vm6, 1.0, %v1855_v55 }
 0x1c2   : > { %v534_v43 = vmul.f32 0.26894143, %v533_v40  ;;  %v605_v6 = vrot.slane %v1482_v62, %v1973_v31  ;;  %v840_v40 = vrot.slane %v832_v41, %v1986_v42 }
 0x1c4   : > { %v537_v45 = vadd.f32 %v535_v44, %v534_v43  ;;  %v638_v20 = vsel %vm369_vm12, %v637_v14, %v605_v6 }
 0x1c6   : > { %vm538_vm4 = vcmp.ge.f32.partialorder %v537_v45, 0.08 }
 0x1c7   : > { %v541_v48 = vsel %vm538_vm4, 0.0, %v537_v45  ;;  %v1483_v0 = vsel %vm538_vm4, 1.0, %v1855_v55  ;;  %v855_v45 = vcombine.high %v840_v40, %v840_v40 }
 0x1c8   : > { %v542_v49 = vmul.f32 0.26894143, %v541_v48  ;;  %v611_v10 = vrot.slane %v1483_v0, %v1973_v31 }
 0x1ca   : > { %v559_v51 = vadd.f32 %v557_v50, %v542_v49  ;;  %v639_v23 = vsel %vm371_vm13, %v638_v20, %v611_v10  ;;  %v871_v50 = vcombine.high %v817_v32, %v817_v32 }
 0x1cc   : > { %vm560_vm1 = vcmp.ge.f32.partialorder %v559_v51, 0.08 }
 0x1cd   : > { %v563_v53 = vsel %vm560_vm1, 0.0, %v559_v51  ;;  %v1484_v3 = vsel %vm560_vm1, 1.0, %v1855_v55  ;;  %vm820_vm1 = vcmp.ge.f32.partialorder %v819_v36, %v1991_v46 }
 0x1ce   : > { %v564_v56 = vmul.f32 0.26894143, %v563_v53  ;;  %v617_v13 = vrot.slane %v1484_v3, %v1973_v31  ;;  %v823_v38 = vsel %vm820_vm1, 0.0, %v819_v36  ;;  %v1491_v3 = vsel %vm820_vm1, 1.0, %v1855_v55 }
 0x1cf   : > { %v824_v39 = vmul.f32 %v823_v38, %v1977_v35 }
 0x1d0   : > { %v574_v57 = vadd.f32 %v572_v54, %v564_v56  ;;  %v640_v22 = vsel %vm373_vm14, %v639_v23, %v617_v13  ;;  %v878_v54 = vrot.slane %v871_v50, %v1986_v42  ;;  %v974_v50 = vld [vmem:[#allocation2 + $0x10] sm:$0xff] (%p384_p0) }
 0x1d2   : > { %vm575_vm8 = vcmp.ge.f32.partialorder %v574_v57, 0.08 }
 0x1d3   : > { %v578_v58 = vsel %vm575_vm8, 0.0, %v574_v57  ;;  %v1485_v4 = vsel %vm575_vm8, 1.0, %v1855_v55  ;;  %v885_v57 = vrot.slane %v878_v54, %v1986_v42 }
 0x1d4   : > { %v579_v60 = vmul.f32 0.26894143, %v578_v58  ;;  %v623_v16 = vrot.slane %v1485_v4, %v1973_v31 }
 0x1d5   : > { %v908_v11 = vcombine.high %v885_v57, %v885_v57 }
 0x1d6   : > { %v582_v63 = vadd.f32 %v580_v59, %v579_v60  ;;  %v641_v30 = vsel %vm375_vm15, %v640_v22, %v623_v16  ;;  %v893_v60 = vcombine.high %v878_v54, %v878_v54 }
 0x1d8   : > { %vm583_vm0 = vcmp.ge.f32.partialorder %v582_v63, 0.08  ;;  %v900_v0 = vrot.slane %v893_v60, %v1986_v42 }
 0x1d9   : > { %v586_v5 = vsel %vm583_vm0, 0.0, %v582_v63  ;;  %v1486_v8 = vsel %vm583_vm0, 1.0, %v1855_v55 }
 0x1da   : > { %v587_v9 = vmul.f32 0.26894143, %v586_v5  ;;  %v629_v19 = vrot.slane %v1486_v8, %v1973_v31  ;;  %v916_v23 = vcombine.high %v900_v0, %v900_v0 }
 0x1dc   : > { %v590_v15 = vadd.f32 %v588_v7, %v587_v9  ;;  %v642_v33 = vsel %vm377_vm5, %v641_v30, %v629_v19 }
 0x1de   : > { %vm591_vm0 = vcmp.ge.f32.partialorder %v590_v15, 0.08 }
 0x1df   : > { %v1487_v26 = vsel %vm591_vm0, 1.0, %v1855_v55  ;;  %v2130_v21 = vsel %vm591_vm0, 0.0, %v590_v15  }
 0x1e0   : > { %v2286_v27 = vmov %v2130_v21  ;;  %v635_v29 = vrot.slane %v1487_v26, %v1973_v31  ;;  %v833_v21 = vcombine.high %v832_v41, %v832_v41 }
 0x1e2   : > { %v643_v34 = vsel %vm379_vm7, %v642_v33, %v635_v29  ;;  %v847_v43 = vrot.slane %v833_v21, %v1986_v42  ;;  %v721_v21 = vpop.f32.mrb[0].mxu1 }
 0x1e3   : > { %1608 = vmatmul.mubr.msk.f32.vlgmr.msra.gmra.mrb[2].mxu1 %vm196_vm2, %v643_v34 }
 0x1e4   : > { %v849_v44 = vadd.f32 %v847_v43, %v824_v39  ;;  %v863_v51 = vcombine.high %v847_v43, %v847_v43  ;;  %v1598_v39 = vpop.f32.mrb[1].mxu1  ;;  %v1490_v43 = vld [vmem:[%s2280_s5] ss:$0 sm:$0xff] }
 0x1e6   : > { %vm850_vm8 = vcmp.ge.f32.partialorder %v849_v44, %v1991_v46 }
 0x1e7   : > { %v853_v47 = vsel %vm850_vm8, 0.0, %v849_v44  ;;  %v1492_v61 = vsel %vm850_vm8, 1.0, %v1855_v55  ;;  %vm2291_vm8 = vcmask (%p384_p0), 778240  }
 0x1e8   : > { %v854_v48 = vmul.f32 %v853_v47, %v1977_v35  ;;  %v927_v2 = vrot.slane %v1492_v61, %v1973_v31  ;;  %v982_v61 = vld [vmem:[#allocation2 + $0x50] sm:$0xff] (%p384_p0) }
 0x1ea   : > { %v857_v49 = vadd.f32 %v855_v45, %v854_v48  ;;  %v965_v9 = vsel %vm367_vm10, %v1491_v3, %v927_v2  ;;  %v1224_v2 = vld [vmem:[#allocation4 + $0x8] sm:$0xff] (%p384_p0)  ;;  %v1225_v3 = vld [vmem:[#allocation4 + $0x10] sm:$0xff] (%p384_p0) }
 0x1ec   : > { %vm858_vm9 = vcmp.ge.f32.partialorder %v857_v49, %v1991_v46 }
 0x1ed   : > { %v861_v52 = vsel %vm858_vm9, 0.0, %v857_v49  ;;  %v1493_v63 = vsel %vm858_vm9, 1.0, %v1855_v55  ;;  %v973_v49 = vld [vmem:[#allocation2 + $0x8] sm:$0xff] (%p384_p0)  ;;  %vm1859_vm9 = vmmov (%p384_p0), 0  }
 0x1ee   : > { %v862_v53 = vmul.f32 %v861_v52, %v1977_v35  ;;  %v933_v7 = vrot.slane %v1493_v63, %v1973_v31  ;;  %1634 = vmatprep.mubr.msk.f32.mxu0 (%p384_p0), %vm1859_vm9, %v1846_v1  ;;  %1645 = vmatprep.mubr.msk.f32.mxu1 (%p384_p0), %vm1859_vm9, %v1846_v1 }
 0x1f0   : > { %v865_v56 = vadd.f32 %v863_v51, %v862_v53  ;;  %v966_v14 = vsel %vm369_vm12, %v965_v9, %v933_v7  ;;  %v1858_v51 = vmov (%p384_p0), 0.0|0.0   ;;  %v975_v53 = vld [vmem:[#allocation2 + $0x18] sm:$0xff] (%p384_p0)  ;;  %v1219_v7 = vld [vmem:[#allocation3] sm:$0xff] (%p384_p0) }
 0x1f1   :  { %1689 = vmatprep.subr.bf16.mxu0 (%p384_p0), %v1858_v51  ;;  %1707 = vmatprep.subr.bf16.mxu1 (%p384_p0), %v1858_v51  ;;  %v1693_v54 = vpack.c.bf16 (%p384_p0), %v975_v53, %v974_v50 }
 0x1f2   : > { %vm866_vm11 = vcmp.ge.f32.partialorder %v865_v56, %v1991_v46 }
 0x1f3   : > { %v869_v58 = vsel %vm866_vm11, 0.0, %v865_v56  ;;  %v1494_v6 = vsel %vm866_vm11, 1.0, %v1855_v55  ;;  %v979_v56 = vld [vmem:[#allocation2 + $0x38] sm:$0xff] (%p384_p0) }
 0x1f4   : > { %v870_v59 = vmul.f32 %v869_v58, %v1977_v35  ;;  %v939_v12 = vrot.slane %v1494_v6, %v1973_v31  ;;  %v980_v58 = vld [vmem:[#allocation2 + $0x40] sm:$0xff] (%p384_p0) }
 0x1f6   : > { %v887_v62 = vadd.f32 %v885_v57, %v870_v59  ;;  %v967_v20 = vsel %vm371_vm13, %v966_v14, %v939_v12  ;;  %v981_v59 = vld [vmem:[#allocation2 + $0x48] sm:$0xff] (%p384_p0)  ;;  %v1065_v14 = vmul.f32 (%p384_p0), 0.26894143, %v2286_v27 }
 0x1f7   :  { %v1702_v60 = vpack.c.bf16 (%p384_p0), %v981_v59, %v980_v58 }
 0x1f8   : > { %vm888_vm6 = vcmp.ge.f32.partialorder %v887_v62, %v1991_v46 }
 0x1f9   : > { %v891_v4 = vsel %vm888_vm6, 0.0, %v887_v62  ;;  %v1495_v10 = vsel %vm888_vm6, 1.0, %v1855_v55  ;;  %v983_v62 = vld [vmem:[#allocation2 + $0x58] sm:$0xff] (%p384_p0) }
 0x1fa   : > { %v892_v5 = vmul.f32 %v891_v4, %v1977_v35  ;;  %v945_v17 = vrot.slane %v1495_v10, %v1973_v31  ;;  %v1705_v63 = vpack.c.bf16 (%p384_p0), %v983_v62, %v982_v61  ;;  %v1221_v10 = vld [vmem:[#allocation3 + $0x10] sm:$0xff] (%p384_p0) }
 0x1fc   : > { %v902_v8 = vadd.f32 %v900_v0, %v892_v5  ;;  %v968_v22 = vsel %vm373_vm14, %v967_v20, %v945_v17  ;;  %v1223_v0 = vld [vmem:[#allocation4] sm:$0xff] (%p384_p0)  ;;  %v1226_v5 = vld [vmem:[#allocation4 + $0x18] sm:$0xff] (%p384_p0) }
 0x1fd   :  { %v1708_v4 = vpack.c.bf16 (%p384_p0), %v1224_v2, %v1223_v0  ;;  %v1711_v6 = vpack.c.bf16 (%p384_p0), %v1226_v5, %v1225_v3 }
 0x1fe   : > { %vm903_vm4 = vcmp.ge.f32.partialorder %v902_v8, %v1991_v46 }
 0x1ff   : > { %v906_v13 = vsel %vm903_vm4, 0.0, %v902_v8  ;;  %v1496_v16 = vsel %vm903_vm4, 1.0, %v1855_v55  ;;  %1709 = vmatpush3.bf16.msra.mxu1 (%p384_p0), %v1708_v4  ;;  %v1220_v8 = vld [vmem:[#allocation3 + $0x8] sm:$0xff] (%p384_p0) }
 0x200   : > { %v907_v15 = vmul.f32 %v906_v13, %v1977_v35  ;;  %v951_v24 = vrot.slane %v1496_v16, %v1973_v31  ;;  %1710 = vmatprep.subr.bf16.mxu1 (%p384_p0), %v1858_v51  ;;  %v1714_v9 = vpack.c.bf16 (%p384_p0), %v1220_v8, %v1219_v7  ;;  %v1499_v13 = vld [vmem:[%s2277_s2] ss:$0 sm:$0xff] (%p384_p0) }
 0x202   : > { %v910_v19 = vadd.f32 %v908_v11, %v907_v15  ;;  %v969_v32 = vsel %vm375_vm15, %v968_v22, %v951_v24  ;;  %v2287_v22 = vmov %v2285_v18  ;;  %v1222_v11 = vld [vmem:[#allocation3 + $0x18] sm:$0xff] (%p384_p0) }
 0x203   :  { %1712 = vmatpush3.bf16.msra.mxu1 (%p384_p0), %v1711_v6  ;;  %v1717_v12 = vpack.c.bf16 (%p384_p0), %v1222_v11, %v1221_v10 }
 0x204   : > { %vm911_vm0 = vcmp.ge.f32.partialorder %v910_v19, %v1991_v46  ;;  %1713 = vmatprep.subr.bf16.mxu1 (%p384_p0), %v1858_v51 }
 0x205   : > { %v1497_v25 = vsel %vm911_vm0, 1.0, %v1855_v55  ;;  %v914_v26 = vsel %vm911_vm0, 0.0, %v910_v19 }
 0x206   : > { %v915_v28 = vmul.f32 %v914_v26, %v1977_v35  ;;  %v957_v29 = vrot.slane %v1497_v25, %v1973_v31  ;;  %v976_v35 = vld [vmem:[#allocation2 + $0x20] sm:$0xff] (%p384_p0)  ;;  %1646 = vmatmul.mubr.msk.f32.vlgmr.msra.gmra.mrb[0].mxu1 (%p384_p0), %vm196_vm2, %v2285_v18 }
 0x207   :  { %1715 = vmatpush3.bf16.msra.mxu1 (%p384_p0), %v1714_v9  ;;  %1656 = vmatprep.mubr.msk.f32.mxu1 (%p384_p0), %vm1859_vm9, %v1846_v1 }
 0x208   : > { %v918_v30 = vadd.f32 %v916_v23, %v915_v28  ;;  %v970_v36 = vsel %vm377_vm5, %v969_v32, %v957_v29  ;;  %1716 = vmatprep.subr.bf16.mxu1 (%p384_p0), %v1858_v51 }
 0x20a   : > { %vm919_vm1 = vcmp.ge.f32.partialorder %v918_v30, %v1991_v46  ;;  %v1696_v46 = vpack.c.bf16 (%p384_p0), %v977_v37, %v976_v35 }
 0x20b   : > { %v1498_v33 = vsel %vm919_vm1, 1.0, %v1855_v55  ;;  %v922_v34 = vsel %vm919_vm1, 0.0, %v918_v30   ;;  %v972_v55 = vld [vmem:[#allocation2] sm:$0xff] (%p384_p0)  ;;  %1718 = vmatpush3.bf16.msra.mxu1 (%p384_p0), %v1717_v12 }
 0x20c   : > { %v963_v41 = vrot.slane %v1498_v33, %v1973_v31  ;;  %1383 = vst.msk [vmem:[#allocation6] sm:$0x1] (%p384_p0), %vm2291_vm8, %v922_v34  ;;  %v1690_v52 = vpack.c.bf16 (%p384_p0), %v973_v49, %v972_v55 }
 0x20e   : > { %v971_v38 = vsel %vm379_vm7, %v970_v36, %v963_v41   ;;  %v2290_v41 = vmov %v922_v34  ;;  %1691 = vmatpush3.bf16.msra.mxu0 (%p384_p0), %v1690_v52 }
 0x20f   : > { %v2288_v48 = vmov %v971_v38  ;;  %1692 = vmatprep.subr.bf16.mxu0 (%p384_p0), %v1858_v51 }
 0x210   :  { %v978_v48 = vld [vmem:[#allocation2 + $0x30] sm:$0xff] (%p384_p0) }
 0x211   :  { %v1699_v57 = vpack.c.bf16 (%p384_p0), %v979_v56, %v978_v48 }
 0x212   :  { %1694 = vmatpush3.bf16.msra.mxu0 (%p384_p0), %v1693_v54 }
 0x213   :  { %1695 = vmatprep.subr.bf16.mxu0 (%p384_p0), %v1858_v51 }
 0x216   :  { %1697 = vmatpush3.bf16.msra.mxu0 (%p384_p0), %v1696_v46 }
 0x217   :  { %1698 = vmatprep.subr.bf16.mxu0 (%p384_p0), %v1858_v51 }
 0x21a   :  { %1700 = vmatpush3.bf16.msra.mxu0 (%p384_p0), %v1699_v57 }
 0x21b   :  { %1701 = vmatprep.subr.bf16.mxu0 (%p384_p0), %v1858_v51 }
 0x21e   :  { %1703 = vmatpush3.bf16.msra.mxu0 (%p384_p0), %v1702_v60 }
 0x21f   :  { %1704 = vmatprep.subr.bf16.mxu0 (%p384_p0), %v1858_v51 }
 0x222   :  { %1706 = vmatpush3.bf16.msra.mxu0 (%p384_p0), %v1705_v63 }
 0x225   :  { %1635 = vmatmul.mubr.msk.f32.vlgmr.msra.gmra.mrb[0].mxu0 (%p384_p0), %vm2292_vm3, %v971_v38 }
 0x2b5   :  { %386 = sbr.rel (!%p384_p0) target bundleno = 194 (0xc2), region = 175 }
 0x2b6   : > { %v794_v40 = vpop.f32.mrb[2].mxu1 }
 0x2b7   : > { %v795_v44 = vadd.f32 %v794_v40, %v721_v21  ;;  %v1609_v45 = vpop.f32.mrb[3].mxu1  ;;  %v2289_v21 = vmov %v2286_v27 }
 0x2b9   : > { %v805_v47 = vadd.f32 %v1490_v43, %v795_v44 }
 0x2bb   : > { %807 = vst [vmem:[%s806_s27] sm:$0xff] %v805_v47 }
 0x2f8   :  { %v1061_v15 = vpop.f32.mrb[0].mxu0 }
 0x2f9   :  { %v1062_v16 = vadd.f32 %v1499_v13, %v1061_v15  ;;  %v1636_v17 = vpop.f32.mrb[1].mxu0 }
 0x2fb   :  { %v1066_v19 = vadd.f32 %v1065_v14, %v1062_v16  ;;  %v1079_v20 = vrot.slane %v1062_v16, %v1986_v42  ;;  %v1118_v32 = vcombine.high %v1062_v16, %v1062_v16  ;;  %v1296_v14 = vpop.f32.mrb[0].mxu1 }
 0x2fc   :  { %v1647_v15 = vpop.f32.mrb[1].mxu1 }
 0x2fd   :  { %vm1067_vm11 = vcmp.ge.f32.partialorder %v1066_v19, 0.08  ;;  %v1080_v18 = vcombine.high %v1079_v20, %v1079_v20  ;;  %v1087_v26 = vrot.slane %v1079_v20, %v1986_v42  ;;  %v1125_v38 = vrot.slane %v1118_v32, %v1986_v42 }
 0x2fe   :  { %v1070_v23 = vsel %vm1067_vm11, 0.0, %v1066_v19  ;;  %v1501_v62 = vsel %vm1067_vm11, 1.0, %v1846_v1 }
 0x2ff   :  { %v1071_v24 = vmul.f32 0.26894143, %v1070_v23  ;;  %v1094_v25 = vrot.slane %v1080_v18, %v1986_v42  ;;  %v1102_v29 = vcombine.high %v1087_v26, %v1087_v26  ;;  %v1132_v40 = vrot.slane %v1125_v38, %v1986_v42 }
 0x300   :  { %v1140_v44 = vcombine.high %v1125_v38, %v1125_v38 }
 0x301   :  { %v1096_v22 = vadd.f32 %v1094_v25, %v1071_v24  ;;  %v1110_v36 = vcombine.high %v1094_v25, %v1094_v25  ;;  %v1155_v51 = vcombine.high %v1132_v40, %v1132_v40 }
 0x302   :  { %v1147_v47 = vrot.slane %v1140_v44, %v1986_v42 }
 0x303   :  { %vm1097_vm6 = vcmp.ge.f32.partialorder %v1096_v22, 0.08 }
 0x304   :  { %v1100_v28 = vsel %vm1097_vm6, 0.0, %v1096_v22  ;;  %v1502_v53 = vsel %vm1097_vm6, 1.0, %v1846_v1  ;;  %v1163_v58 = vcombine.high %v1147_v47, %v1147_v47 }
 0x305   :  { %v1101_v27 = vmul.f32 0.26894143, %v1100_v28  ;;  %v1174_v46 = vrot.slane %v1502_v53, %v1973_v31 }
 0x307   :  { %v1104_v30 = vadd.f32 %v1102_v29, %v1101_v27  ;;  %v1212_v0 = vsel %vm367_vm10, %v1501_v62, %v1174_v46  ;;  %vm2293_vm10 = vcmask 253952  }
 0x309   :  { %vm1105_vm4 = vcmp.ge.f32.partialorder %v1104_v30, 0.08 }
 0x30a   :  { %v1108_v33 = vsel %vm1105_vm4, 0.0, %v1104_v30  ;;  %v1503_v54 = vsel %vm1105_vm4, 1.0, %v1846_v1 }
 0x30b   :  { %v1109_v34 = vmul.f32 0.26894143, %v1108_v33  ;;  %v1180_v57 = vrot.slane %v1503_v54, %v1973_v31 }
 0x30d   :  { %v1112_v41 = vadd.f32 %v1110_v36, %v1109_v34  ;;  %v1213_v5 = vsel %vm369_vm12, %v1212_v0, %v1180_v57 }
 0x30f   :  { %vm1113_vm0 = vcmp.ge.f32.partialorder %v1112_v41, 0.08 }
 0x310   :  { %v1116_v21 = vsel %vm1113_vm0, 0.0, %v1112_v41  ;;  %v1504_v37 = vsel %vm1113_vm0, 1.0, %v1846_v1 }
 0x311   :  { %v1117_v39 = vmul.f32 0.26894143, %v1116_v21  ;;  %v1186_v61 = vrot.slane %v1504_v37, %v1973_v31 }
 0x313   :  { %v1134_v43 = vadd.f32 %v1132_v40, %v1117_v39  ;;  %v1214_v6 = vsel %vm371_vm13, %v1213_v5, %v1186_v61 }
 0x315   :  { %vm1135_vm1 = vcmp.ge.f32.partialorder %v1134_v43, 0.08 }
 0x316   :  { %v1138_v45 = vsel %vm1135_vm1, 0.0, %v1134_v43  ;;  %v1505_v42 = vsel %vm1135_vm1, 1.0, %v1846_v1 }
 0x317   :  { %v1139_v55 = vmul.f32 0.26894143, %v1138_v45  ;;  %v1192_v63 = vrot.slane %v1505_v42, %v1973_v31 }
 0x319   :  { %v1149_v49 = vadd.f32 %v1147_v47, %v1139_v55  ;;  %v1215_v9 = vsel %vm373_vm14, %v1214_v6, %v1192_v63 }
 0x31b   :  { %vm1150_vm8 = vcmp.ge.f32.partialorder %v1149_v49, 0.08 }
 0x31c   :  { %v1153_v50 = vsel %vm1150_vm8, 0.0, %v1149_v49  ;;  %v1506_v48 = vsel %vm1150_vm8, 1.0, %v1846_v1 }
 0x31d   :  { %v1154_v52 = vmul.f32 0.26894143, %v1153_v50  ;;  %v1198_v3 = vrot.slane %v1506_v48, %v1973_v31 }
 0x31f   :  { %v1157_v35 = vadd.f32 %v1155_v51, %v1154_v52  ;;  %v1216_v11 = vsel %vm375_vm15, %v1215_v9, %v1198_v3 }
 0x321   :  { %vm1158_vm9 = vcmp.ge.f32.partialorder %v1157_v35, 0.08 }
 0x322   :  { %v1161_v56 = vsel %vm1158_vm9, 0.0, %v1157_v35  ;;  %v1507_v59 = vsel %vm1158_vm9, 1.0, %v1846_v1 }
 0x323   :  { %v1162_v60 = vmul.f32 0.26894143, %v1161_v56  ;;  %v1204_v4 = vrot.slane %v1507_v59, %v1973_v31 }
 0x325   :  { %v1165_v2 = vadd.f32 %v1163_v58, %v1162_v60  ;;  %v1217_v12 = vsel %vm377_vm5, %v1216_v11, %v1204_v4 }
 0x327   :  { %vm1166_vm3 = vcmp.ge.f32.partialorder %v1165_v2, 0.08 }
 0x328   :  { %v1508_v7 = vsel %vm1166_vm3, 1.0, %v1846_v1  ;;  %v1169_v8 = vsel %vm1166_vm3, 0.0, %v1165_v2  ;;  %v1511_v1 = vld [vmem:[%s2280_s5] ss:$0 sm:$0xff] }
 0x329   :  { %v1210_v10 = vrot.slane %v1508_v7, %v1973_v31  ;;  %1385 = vst.msk [vmem:[#allocation7] sm:$0x1] %vm2293_vm10, %v1169_v8 }
 0x32b   :  { %v1218_v13 = vsel %vm379_vm7, %v1217_v12, %v1210_v10 }
 0x32c   :  { %1657 = vmatmul.mubr.msk.f32.vlgmr.msra.gmra.mrb[2].mxu1 %vm196_vm2, %v1218_v13 }
 0x3ff   :  { %v1369_v16 = vpop.f32.mrb[2].mxu1 }
 0x400   :  { %v1370_v31 = vadd.f32 %v1369_v16, %v1296_v14  ;;  %v1658_v17 = vpop.f32.mrb[3].mxu1 }
 0x402   :  { %v1380_v19 = vadd.f32 %v1511_v1, %v1370_v31 }
 0x404   :  { %1381 = vst [vmem:[#allocation8 + $0x38] sm:$0xff] %v1380_v19 }
 0x405   :  { %1787 = shalt.err (!%p1784_p5)
}
 0x406   :  { %s1788_s10 = scalar_lea.hbm %s2281_s6, 1024 }
 0x407   :  { %p1789_p6 = scmp.ne.s32.totalorder %s2281_s6, %s1788_s10  ;;  %p1792_p7 = scmp.lt.u32.totalorder %s1788_s10, %s2281_s6 }
 0x409   :  { %p1794_p8 = pnand %p1792_p7, %p1789_p6 }
 0x40b   :  { %1797 = shalt.err (!%p1794_p8)
}
 0x40c   :  { %s1861_s13 = smov 128   ;;  %s1862_s4 = smov 8  }
 0x40d   :  { %1397 = dma.vmem_to_hbm [thread:$0]  %s1392_s30, 1024, %s2281_s6, [#allocation9], %s1861_s13, %s1861_s13, %s1862_s4  }
 0x40e   :  { %1824 = dma.done.wait [#allocation9], 1024  }
 0x40f   :  { %1825 = vsyncadd [#allocation9], 4294966272 }
 0x410   :  { %1401 = vsyncpa [#allocation9], 1 }
 0x411   :  { %1402 = vsyncmov [#allocation5] }
 0x414   :  { %s1403_s16 = vpop.sfrf %1402 }
 0x415   :  { %p1512_p9 = scmp.ne.s32.totalorder %s1403_s16, 0 }
 0x417   :  { %1407 = shalt.err (%p1512_p9)  }
 0x418   :  { %1409 = vsyncmov [#allocation5 + $0x1] }
 0x41b   :  { %s1410_s17 = vpop.sfrf %1409 }
 0x41c   :  { %p1513_p10 = scmp.ne.s32.totalorder %s1410_s17, 0 }
 0x41e   :  { %1414 = shalt.err (%p1513_p10)  }
 0x41f   :  { %1416 = vsyncmov [#allocation5 + $0x2] }
 0x422   :  { %s1417_s18 = vpop.sfrf %1416 }
 0x423   :  { %p1514_p11 = scmp.ne.s32.totalorder %s1417_s18, 0 }
 0x425   :  { %1421 = shalt.err (%p1514_p11)  }

</bundles_post_ra>
